<compile_context>
chip_gen: v7x
topology: tpu7x:2x2x1
jax: 0.10.0
libtpu: 0.0.40
codegen_flags: <defaults>
</compile_context>

<pallas_src>
import jax
import jax.numpy as jnp
from jax.experimental import pallas as pl
from jax.experimental.pallas import tpu as pltpu

# ---- scaled-down DistilBERT config (original: H=768, 6 layers, 12 heads, 3072 inter) ----
B, S = 2, 8
H = 64                 # hidden size (scaled from 768)
N_HEADS = 4            # scaled from 12
D_HEAD = H // N_HEADS
INTER = 128            # FFN intermediate (scaled from 3072)
N_LAYERS = 2           # scaled from 6
VOCAB = 1000
MAX_POS = 32
POOL_DIM = 4 * H       # concat of last 4 token states (module: 4*768 = 3072)
CLS_HIDDEN = 512       # linear1 out (as in module)
N_CLASSES = 3          # linear2 out (as in module)
CLS_PAD = 128          # lane-dense padded logits width; slice [:, :3] in wrapper
LN_EPS = 1e-12


def _layer_norm(x, g, b):
    mu = jnp.mean(x, axis=-1, keepdims=True)
    var = jnp.mean((x - mu) ** 2, axis=-1, keepdims=True)
    return (x - mu) * jax.lax.rsqrt(var + LN_EPS) * g + b


# ------------------------- fused Pallas kernel (one batch element / grid step) -------------------------

def fused_forward_kernel(x_ref, neg_ref,
                         wqkv_ref, wo_ref, w1_ref, w2_ref, small_ref,
                         cw1_ref, cw2_ref, cbias_ref,
                         out_ref):
    """N_LAYERS transformer layers + last-4-token pooling + classifier MLP."""
    x = x_ref[0]                                                   # (S, H) f32, post emb-LN
    # Additive attention mask broadcast ONCE for all layers and heads.
    neg_bc = jnp.broadcast_to(neg_ref[...], (N_HEADS, S, S))       # (NH, S, S) f32
    scale = 1.0 / (D_HEAD ** 0.5)

    for l in range(N_LAYERS):                                      # unrolled (N_LAYERS = 2)
        wqkv = wqkv_ref[l]                                         # (H, 3H)    bf16 [Wq|Wk|Wv]
        wo = wo_ref[l]                                             # (H, H)     bf16
        w1 = w1_ref[l]                                             # (H, INTER) bf16
        w2 = w2_ref[l]                                             # (INTER, H) bf16
        small = small_ref[l]                                       # (8, 3H) f32 packed
        bo = small[0:1, :H]                                        # attn out bias
        b2 = small[1:2, :H]                                        # FFN out bias
        ln1g, ln1b = small[2:3, :H], small[3:4, :H]
        ln2g, ln2b = small[4:5, :H], small[5:6, :H]
        bqkv = small[6:7, :]                                       # (1, 3H) fused QKV bias
        b1 = small[7:8, :INTER]                                    # (1, INTER) FFN in bias

        # Fused QKV projection: one lane-dense (S, H) x (H, 3H) MXU op.
        qkv = jnp.dot(x.astype(jnp.bfloat16), wqkv,
                      preferred_element_type=jnp.float32) + bqkv   # (S, 3H) f32

        # Batched multi-head attention: one score einsum, one softmax, one PV einsum.
        qh = jnp.stack([qkv[:, h * D_HEAD:(h + 1) * D_HEAD]
                        for h in range(N_HEADS)], axis=0)          # (NH, S, D)
        kh = jnp.stack([qkv[:, H + h * D_HEAD:H + (h + 1) * D_HEAD]
                        for h in range(N_HEADS)], axis=0)          # (NH, S, D)
        vh = jnp.stack([qkv[:, 2 * H + h * D_HEAD:2 * H + (h + 1) * D_HEAD]
                        for h in range(N_HEADS)], axis=0)          # (NH, S, D)
        s = jnp.einsum('hqd,hkd->hqk', qh, kh,
                       preferred_element_type=jnp.float32) * scale + neg_bc
        p = jax.nn.softmax(s, axis=-1)                             # (NH, S, S) f32
        ctx = jnp.einsum('hqk,hkd->hqd', p, vh,
                         preferred_element_type=jnp.float32)       # (NH, S, D)
        # Concat-free "concat": lane concatenation, then ONE K=H output projection.
        ctx = jnp.concatenate([ctx[h] for h in range(N_HEADS)], axis=-1)   # (S, H)
        attn = jnp.dot(ctx.astype(jnp.bfloat16), wo,
                       preferred_element_type=jnp.float32) + bo
        h1 = _layer_norm(x + attn, ln1g, ln1b)

        # Feed-forward block
        ff = jnp.dot(h1.astype(jnp.bfloat16), w1,
                     preferred_element_type=jnp.float32) + b1
        # TODO(synk): HF DistilBERT uses exact (erf) GELU; tanh approximation used here.
        ff = jax.nn.gelu(ff, approximate=True)
        ff = jnp.dot(ff.astype(jnp.bfloat16), w2,
                     preferred_element_type=jnp.float32) + b2
        x = _layer_norm(h1 + ff, ln2g, ln2b)

    # pooled = cat(last_hidden_state[:, i] for i in [-4,-3,-2,-1]) along hidden.
    # Lane concat -> single (1, 4H) x (4H, 512) matmul (K=4H instead of four K=H chains).
    pooled = jnp.concatenate([x[S - 4 + i:S - 3 + i, :] for i in range(4)], axis=-1)  # (1, 4H)
    hc = jnp.dot(pooled.astype(jnp.bfloat16), cw1_ref[...],
                 preferred_element_type=jnp.float32) + cbias_ref[0:1, :]
    hc = jnp.maximum(hc, 0.0)                                      # relu1 (drop0/drop1 = id)

    # linear2 lane-padded to 128 wide; relu2 on (padded) logits as in the module.
    logits = jnp.dot(hc.astype(jnp.bfloat16), cw2_ref[...],
                     preferred_element_type=jnp.float32) + cbias_ref[1:2, :CLS_PAD]
    out_ref[0] = jnp.maximum(logits, 0.0)                          # (1, CLS_PAD)


# ------------------------- wrapper -------------------------

def intent_classifier_forward(input_ids, attention_mask, params):
    bsz, seq = input_ids.shape
    # Embeddings (gather + LayerNorm) — plain-JAX glue, not the hot path.
    x = params['word_emb'][input_ids] + params['pos_emb'][None, :seq, :]
    x = _layer_norm(x, params['emb_ln_g'], params['emb_ln_b'])     # (B, S, H) f32

    # Additive attention mask, computed once for all layers, pre-shaped (B, 1, S).
    neg = ((1.0 - attention_mask.astype(jnp.float32)) * -1e9).reshape(bsz, 1, seq)

    def batch_map(b):      # per-batch tiles
        return (b, 0, 0)

    def const3(b):         # resident 3-D weights
        return (0, 0, 0)

    def const2(b):         # resident 2-D weights
        return (0, 0)

    in_specs = [
        pl.BlockSpec((1, S, H), batch_map),                  # x (per-batch)
        pl.BlockSpec((1, 1, S), batch_map),                  # additive mask (per-batch)
        pl.BlockSpec((N_LAYERS, H, 3 * H), const3),          # wqkv (resident)
        pl.BlockSpec((N_LAYERS, H, H), const3),              # wo
        pl.BlockSpec((N_LAYERS, H, INTER), const3),          # w1
        pl.BlockSpec((N_LAYERS, INTER, H), const3),          # w2
        pl.BlockSpec((N_LAYERS, 8, 3 * H), const3),          # packed small per-layer params
        pl.BlockSpec((POOL_DIM, CLS_HIDDEN), const2),        # cw1
        pl.BlockSpec((CLS_HIDDEN, CLS_PAD), const2),         # cw2 (lane-padded)
        pl.BlockSpec((2, CLS_HIDDEN), const2),               # cbias (row0=cb1, row1=cb2 padded)
    ]

    logits_pad = pl.pallas_call(
        fused_forward_kernel,
        grid=(bsz,),
        in_specs=in_specs,
        out_specs=pl.BlockSpec((1, 1, CLS_PAD), batch_map),
        out_shape=jax.ShapeDtypeStruct((bsz, 1, CLS_PAD), jnp.float32),
        compiler_params=pltpu.CompilerParams(dimension_semantics=("parallel",)),
    )(x, neg,
      params['wqkv'], params['wo'], params['w1'], params['w2'], params['small'],
      params['cw1'], params['cw2'], params['cbias'])

    return logits_pad[:, 0, :N_CLASSES]


# ------------------------- deterministic params -------------------------

def init_params(key):
    keys = iter(jax.random.split(key, 16))

    def nrm(shape, scale=0.02):
        return jax.random.normal(next(keys), shape, jnp.float32) * scale

    word_emb = nrm((VOCAB, H))
    pos_emb = nrm((MAX_POS, H))

    wqkv, wo, w1, w2 = [], [], [], []
    for _ in range(N_LAYERS):
        wqkv.append(nrm((H, 3 * H)))
        wo.append(nrm((H, H)))
        w1.append(nrm((H, INTER)))
        w2.append(nrm((INTER, H)))

    # Packed per-layer small params, 3H = 192 lanes wide:
    #   row 0: attn-out bias  (first H lanes)   row 1: FFN-out bias  (first H lanes)
    #   row 2/3: LN1 gamma/beta (first H lanes) row 4/5: LN2 gamma/beta (first H lanes)
    #   row 6: fused QKV bias (3H lanes)        row 7: FFN-in bias   (first INTER lanes)
    small_one = jnp.zeros((8, 3 * H), jnp.float32)
    small_one = small_one.at[2, :H].set(1.0).at[4, :H].set(1.0)     # LN gammas = 1
    small = jnp.stack([small_one] * N_LAYERS)                       # (L, 8, 3H)

    cw1 = nrm((POOL_DIM, CLS_HIDDEN))
    cw2 = jnp.zeros((CLS_HIDDEN, CLS_PAD), jnp.float32).at[:, :N_CLASSES].set(
        nrm((CLS_HIDDEN, N_CLASSES)))

    return {
        'word_emb': word_emb,
        'pos_emb': pos_emb,
        'emb_ln_g': jnp.ones((H,), jnp.float32),
        'emb_ln_b': jnp.zeros((H,), jnp.float32),
        # stacked per-layer weights (leading N_LAYERS dim), bf16 MXU operands
        'wqkv': jnp.stack(wqkv).astype(jnp.bfloat16),                # (L, H, 3H)
        'wo': jnp.stack(wo).astype(jnp.bfloat16),                    # (L, H, H)
        'w1': jnp.stack(w1).astype(jnp.bfloat16),                    # (L, H, INTER)
        'w2': jnp.stack(w2).astype(jnp.bfloat16),                    # (L, INTER, H)
        'small': small,                                              # (L, 8, 3H) f32
        # classifier head (W2 / b2 lane-padded to 128 for a lane-dense output)
        'cw1': cw1.astype(jnp.bfloat16),                             # (4H, 512)
        'cw2': cw2.astype(jnp.bfloat16),                             # (512, 128)
        'cbias': jnp.zeros((2, CLS_HIDDEN), jnp.float32),            # row0=cb1, row1=cb2(padded)
    }


if __name__ == "__main__":
    key = jax.random.PRNGKey(0)
    k_param, k_ids = jax.random.split(key)

    params = init_params(k_param)
    input_ids = jax.random.randint(k_ids, (B, S), 0, VOCAB, dtype=jnp.int32)
    attention_mask = jnp.array([[1] * S, [1] * (S - 2) + [0] * 2], dtype=jnp.int32)

    logits = jax.jit(intent_classifier_forward)(input_ids, attention_mask, params)
    logits = jax.block_until_ready(logits)
    assert logits.shape == (B, N_CLASSES)
    assert bool(jnp.all(jnp.isfinite(logits)))
    print("KERNEL_OK")
</pallas_src>

<mosaic_0001>
module attributes {stable_mosaic.version = 11 : i64} {
  func.func @fused_forward_kernel(%arg0: i32, %arg1: memref<1x8x64xf32, #tpu.memory_space<vmem>>, %arg2: memref<1x1x8xf32, #tpu.memory_space<vmem>>, %arg3: memref<2x64x192xbf16, #tpu.memory_space<vmem>>, %arg4: memref<2x64x64xbf16, #tpu.memory_space<vmem>>, %arg5: memref<2x64x128xbf16, #tpu.memory_space<vmem>>, %arg6: memref<2x128x64xbf16, #tpu.memory_space<vmem>>, %arg7: memref<2x8x192xf32, #tpu.memory_space<vmem>>, %arg8: memref<256x512xbf16, #tpu.memory_space<vmem>>, %arg9: memref<512x128xbf16, #tpu.memory_space<vmem>>, %arg10: memref<2x512xf32, #tpu.memory_space<vmem>>, %arg11: memref<1x1x128xf32, #tpu.memory_space<vmem>>) attributes {dimension_semantics = [#tpu.dimension_semantics<parallel>], iteration_bounds = array<i64: 2>, scalar_prefetch = 0 : i64, scratch_operands = 0 : i64, tpu.core_type = #tpu.core_type<tc>, window_params = [{transform_indices = @transform_0, window_bounds = array<i64: 1, 8, 64>}, {transform_indices = @transform_1, window_bounds = array<i64: 1, 1, 8>}, {pipeline_mode = #tpu.pipeline_mode<synchronous>, transform_indices = @transform_2, window_bounds = array<i64: 2, 64, 192>}, {pipeline_mode = #tpu.pipeline_mode<synchronous>, transform_indices = @transform_3, window_bounds = array<i64: 2, 64, 64>}, {pipeline_mode = #tpu.pipeline_mode<synchronous>, transform_indices = @transform_4, window_bounds = array<i64: 2, 64, 128>}, {pipeline_mode = #tpu.pipeline_mode<synchronous>, transform_indices = @transform_5, window_bounds = array<i64: 2, 128, 64>}, {pipeline_mode = #tpu.pipeline_mode<synchronous>, transform_indices = @transform_6, window_bounds = array<i64: 2, 8, 192>}, {pipeline_mode = #tpu.pipeline_mode<synchronous>, transform_indices = @transform_7, window_bounds = array<i64: 256, 512>}, {pipeline_mode = #tpu.pipeline_mode<synchronous>, transform_indices = @transform_8, window_bounds = array<i64: 512, 128>}, {pipeline_mode = #tpu.pipeline_mode<synchronous>, transform_indices = @transform_9, window_bounds = array<i64: 2, 512>}, {transform_indices = @transform_10, window_bounds = array<i64: 1, 1, 128>}]} {
    %c0 = arith.constant 0 : index
    %c0_0 = arith.constant 0 : index
    %c0_1 = arith.constant 0 : index
    %0 = vector.load %arg1[%c0, %c0_0, %c0_1] : memref<1x8x64xf32, #tpu.memory_space<vmem>>, vector<1x8x64xf32>
    %1 = vector.shape_cast %0 : vector<1x8x64xf32> to vector<8x64xf32>
    %c0_2 = arith.constant 0 : index
    %c0_3 = arith.constant 0 : index
    %c0_4 = arith.constant 0 : index
    %2 = vector.load %arg2[%c0_2, %c0_3, %c0_4] : memref<1x1x8xf32, #tpu.memory_space<vmem>>, vector<1x1x8xf32>
    %3 = vector.shape_cast %2 : vector<1x1x8xf32> to vector<1x1x8xf32>
    %4 = vector.broadcast %3 : vector<1x1x8xf32> to vector<4x8x8xf32>
    %c0_5 = arith.constant 0 : index
    %c0_6 = arith.constant 0 : index
    %c0_7 = arith.constant 0 : index
    %5 = vector.load %arg3[%c0_5, %c0_6, %c0_7] : memref<2x64x192xbf16, #tpu.memory_space<vmem>>, vector<1x64x192xbf16>
    %6 = vector.shape_cast %5 : vector<1x64x192xbf16> to vector<64x192xbf16>
    %c0_8 = arith.constant 0 : index
    %c0_9 = arith.constant 0 : index
    %c0_10 = arith.constant 0 : index
    %7 = vector.load %arg4[%c0_8, %c0_9, %c0_10] : memref<2x64x64xbf16, #tpu.memory_space<vmem>>, vector<1x64x64xbf16>
    %8 = vector.shape_cast %7 : vector<1x64x64xbf16> to vector<64x64xbf16>
    %c0_11 = arith.constant 0 : index
    %c0_12 = arith.constant 0 : index
    %c0_13 = arith.constant 0 : index
    %9 = vector.load %arg5[%c0_11, %c0_12, %c0_13] : memref<2x64x128xbf16, #tpu.memory_space<vmem>>, vector<1x64x128xbf16>
    %10 = vector.shape_cast %9 : vector<1x64x128xbf16> to vector<64x128xbf16>
    %c0_14 = arith.constant 0 : index
    %c0_15 = arith.constant 0 : index
    %c0_16 = arith.constant 0 : index
    %11 = vector.load %arg6[%c0_14, %c0_15, %c0_16] : memref<2x128x64xbf16, #tpu.memory_space<vmem>>, vector<1x128x64xbf16>
    %12 = vector.shape_cast %11 : vector<1x128x64xbf16> to vector<128x64xbf16>
    %c0_17 = arith.constant 0 : index
    %c0_18 = arith.constant 0 : index
    %c0_19 = arith.constant 0 : index
    %13 = vector.load %arg7[%c0_17, %c0_18, %c0_19] : memref<2x8x192xf32, #tpu.memory_space<vmem>>, vector<1x8x192xf32>
    %14 = vector.shape_cast %13 : vector<1x8x192xf32> to vector<8x192xf32>
    %15 = vector.extract_strided_slice %14 {offsets = [0, 0], sizes = [1, 64], strides = [1, 1]} : vector<8x192xf32> to vector<1x64xf32>
    %16 = vector.extract_strided_slice %14 {offsets = [1, 0], sizes = [1, 64], strides = [1, 1]} : vector<8x192xf32> to vector<1x64xf32>
    %17 = vector.extract_strided_slice %14 {offsets = [2, 0], sizes = [1, 64], strides = [1, 1]} : vector<8x192xf32> to vector<1x64xf32>
    %18 = vector.extract_strided_slice %14 {offsets = [3, 0], sizes = [1, 64], strides = [1, 1]} : vector<8x192xf32> to vector<1x64xf32>
    %19 = vector.extract_strided_slice %14 {offsets = [4, 0], sizes = [1, 64], strides = [1, 1]} : vector<8x192xf32> to vector<1x64xf32>
    %20 = vector.extract_strided_slice %14 {offsets = [5, 0], sizes = [1, 64], strides = [1, 1]} : vector<8x192xf32> to vector<1x64xf32>
    %21 = vector.extract_strided_slice %14 {offsets = [6, 0], sizes = [1, 192], strides = [1, 1]} : vector<8x192xf32> to vector<1x192xf32>
    %22 = vector.extract_strided_slice %14 {offsets = [7, 0], sizes = [1, 128], strides = [1, 1]} : vector<8x192xf32> to vector<1x128xf32>
    %23 = arith.truncf %1 : vector<8x64xf32> to vector<8x64xbf16>
    %cst = arith.constant dense<0.000000e+00> : vector<8x192xf32>
    %24 = tpu.matmul %23, %6, %cst {dimension_numbers = #tpu.dot_dimension_numbers<[1], [0], [0], [1], [0, 0, 1, 1], [], []>} : vector<8x64xbf16>, vector<64x192xbf16>, vector<8x192xf32> -> vector<8x192xf32>
    %25 = vector.broadcast %21 : vector<1x192xf32> to vector<8x192xf32>
    %26 = arith.addf %24, %25 : vector<8x192xf32>
    %27 = vector.extract_strided_slice %26 {offsets = [0, 0], sizes = [8, 16], strides = [1, 1]} : vector<8x192xf32> to vector<8x16xf32>
    %28 = vector.extract_strided_slice %26 {offsets = [0, 16], sizes = [8, 16], strides = [1, 1]} : vector<8x192xf32> to vector<8x16xf32>
    %29 = vector.extract_strided_slice %26 {offsets = [0, 32], sizes = [8, 16], strides = [1, 1]} : vector<8x192xf32> to vector<8x16xf32>
    %30 = vector.extract_strided_slice %26 {offsets = [0, 48], sizes = [8, 16], strides = [1, 1]} : vector<8x192xf32> to vector<8x16xf32>
    %31 = vector.shape_cast %27 : vector<8x16xf32> to vector<1x8x16xf32>
    %32 = vector.shape_cast %28 : vector<8x16xf32> to vector<1x8x16xf32>
    %33 = vector.shape_cast %29 : vector<8x16xf32> to vector<1x8x16xf32>
    %34 = vector.shape_cast %30 : vector<8x16xf32> to vector<1x8x16xf32>
    %35 = tpu.concatenate %31, %32, %33, %34 in 0 : vector<1x8x16xf32>, vector<1x8x16xf32>, vector<1x8x16xf32>, vector<1x8x16xf32> -> vector<4x8x16xf32>
    %36 = vector.extract_strided_slice %26 {offsets = [0, 64], sizes = [8, 16], strides = [1, 1]} : vector<8x192xf32> to vector<8x16xf32>
    %37 = vector.extract_strided_slice %26 {offsets = [0, 80], sizes = [8, 16], strides = [1, 1]} : vector<8x192xf32> to vector<8x16xf32>
    %38 = vector.extract_strided_slice %26 {offsets = [0, 96], sizes = [8, 16], strides = [1, 1]} : vector<8x192xf32> to vector<8x16xf32>
    %39 = vector.extract_strided_slice %26 {offsets = [0, 112], sizes = [8, 16], strides = [1, 1]} : vector<8x192xf32> to vector<8x16xf32>
    %40 = vector.shape_cast %36 : vector<8x16xf32> to vector<1x8x16xf32>
    %41 = vector.shape_cast %37 : vector<8x16xf32> to vector<1x8x16xf32>
    %42 = vector.shape_cast %38 : vector<8x16xf32> to vector<1x8x16xf32>
    %43 = vector.shape_cast %39 : vector<8x16xf32> to vector<1x8x16xf32>
    %44 = tpu.concatenate %40, %41, %42, %43 in 0 : vector<1x8x16xf32>, vector<1x8x16xf32>, vector<1x8x16xf32>, vector<1x8x16xf32> -> vector<4x8x16xf32>
    %45 = vector.extract_strided_slice %26 {offsets = [0, 128], sizes = [8, 16], strides = [1, 1]} : vector<8x192xf32> to vector<8x16xf32>
    %46 = vector.extract_strided_slice %26 {offsets = [0, 144], sizes = [8, 16], strides = [1, 1]} : vector<8x192xf32> to vector<8x16xf32>
    %47 = vector.extract_strided_slice %26 {offsets = [0, 160], sizes = [8, 16], strides = [1, 1]} : vector<8x192xf32> to vector<8x16xf32>
    %48 = vector.extract_strided_slice %26 {offsets = [0, 176], sizes = [8, 16], strides = [1, 1]} : vector<8x192xf32> to vector<8x16xf32>
    %49 = vector.shape_cast %45 : vector<8x16xf32> to vector<1x8x16xf32>
    %50 = vector.shape_cast %46 : vector<8x16xf32> to vector<1x8x16xf32>
    %51 = vector.shape_cast %47 : vector<8x16xf32> to vector<1x8x16xf32>
    %52 = vector.shape_cast %48 : vector<8x16xf32> to vector<1x8x16xf32>
    %53 = tpu.concatenate %49, %50, %51, %52 in 0 : vector<1x8x16xf32>, vector<1x8x16xf32>, vector<1x8x16xf32>, vector<1x8x16xf32> -> vector<4x8x16xf32>
    "tpu.trace_start"() <{level = 10 : i32, message = "hqd,hkd->hqk"}> : () -> ()
    %cst_20 = arith.constant dense<0.000000e+00> : vector<4x8x8xf32>
    %54 = tpu.matmul %35, %44, %cst_20 {dimension_numbers = #tpu.dot_dimension_numbers<[2], [2], [1], [1], [0, 0, 0, 1, 1, 1], [0], [0]>} : vector<4x8x16xf32>, vector<4x8x16xf32>, vector<4x8x8xf32> -> vector<4x8x8xf32>
    "tpu.trace_stop"() : () -> ()
    %cst_21 = arith.constant 2.500000e-01 : f32
    %55 = vector.broadcast %cst_21 : f32 to vector<4x8x8xf32>
    %56 = arith.mulf %54, %55 : vector<4x8x8xf32>
    %57 = arith.addf %56, %4 : vector<4x8x8xf32>
    %cst_22 = arith.constant dense<0xFF800000> : vector<4x8xf32>
    %58 = vector.multi_reduction <maximumf>, %57, %cst_22 [2] : vector<4x8x8xf32> to vector<4x8xf32>
    %cst_23 = arith.constant 0xFF800000 : f32
    %59 = vector.broadcast %cst_23 : f32 to vector<4x8xf32>
    %60 = arith.maximumf %59, %58 : vector<4x8xf32>
    %61 = vector.shape_cast %60 : vector<4x8xf32> to vector<4x8x1xf32>
    %62 = vector.broadcast %61 : vector<4x8x1xf32> to vector<4x8x8xf32>
    %63 = arith.subf %57, %62 : vector<4x8x8xf32>
    %64 = math.exp %63 : vector<4x8x8xf32>
    %cst_24 = arith.constant dense<0.000000e+00> : vector<4x8xf32>
    %65 = vector.multi_reduction <add>, %64, %cst_24 [2] : vector<4x8x8xf32> to vector<4x8xf32>
    %66 = vector.shape_cast %65 : vector<4x8xf32> to vector<4x8x1xf32>
    %67 = vector.broadcast %66 : vector<4x8x1xf32> to vector<4x8x8xf32>
    %68 = arith.divf %64, %67 : vector<4x8x8xf32>
    "tpu.trace_start"() <{level = 10 : i32, message = "hqk,hkd->hqd"}> : () -> ()
    %cst_25 = arith.constant dense<0.000000e+00> : vector<4x8x16xf32>
    %69 = tpu.matmul %68, %53, %cst_25 {dimension_numbers = #tpu.dot_dimension_numbers<[2], [1], [1], [2], [0, 0, 0, 1, 1, 2], [0], [0]>} : vector<4x8x8xf32>, vector<4x8x16xf32>, vector<4x8x16xf32> -> vector<4x8x16xf32>
    "tpu.trace_stop"() : () -> ()
    %70 = vector.extract_strided_slice %69 {offsets = [0, 0, 0], sizes = [1, 8, 16], strides = [1, 1, 1]} : vector<4x8x16xf32> to vector<1x8x16xf32>
    %71 = vector.shape_cast %70 : vector<1x8x16xf32> to vector<8x16xf32>
    %72 = vector.extract_strided_slice %69 {offsets = [1, 0, 0], sizes = [1, 8, 16], strides = [1, 1, 1]} : vector<4x8x16xf32> to vector<1x8x16xf32>
    %73 = vector.shape_cast %72 : vector<1x8x16xf32> to vector<8x16xf32>
    %74 = vector.extract_strided_slice %69 {offsets = [2, 0, 0], sizes = [1, 8, 16], strides = [1, 1, 1]} : vector<4x8x16xf32> to vector<1x8x16xf32>
    %75 = vector.shape_cast %74 : vector<1x8x16xf32> to vector<8x16xf32>
    %76 = vector.extract_strided_slice %69 {offsets = [3, 0, 0], sizes = [1, 8, 16], strides = [1, 1, 1]} : vector<4x8x16xf32> to vector<1x8x16xf32>
    %77 = vector.shape_cast %76 : vector<1x8x16xf32> to vector<8x16xf32>
    %78 = tpu.concatenate %71, %73, %75, %77 in 1 : vector<8x16xf32>, vector<8x16xf32>, vector<8x16xf32>, vector<8x16xf32> -> vector<8x64xf32>
    %79 = arith.truncf %78 : vector<8x64xf32> to vector<8x64xbf16>
    %cst_26 = arith.constant dense<0.000000e+00> : vector<8x64xf32>
    %80 = tpu.matmul %79, %8, %cst_26 {dimension_numbers = #tpu.dot_dimension_numbers<[1], [0], [0], [1], [0, 0, 1, 1], [], []>} : vector<8x64xbf16>, vector<64x64xbf16>, vector<8x64xf32> -> vector<8x64xf32>
    %81 = vector.broadcast %15 : vector<1x64xf32> to vector<8x64xf32>
    %82 = arith.addf %80, %81 : vector<8x64xf32>
    %83 = arith.addf %1, %82 : vector<8x64xf32>
    %cst_27 = arith.constant dense<0.000000e+00> : vector<8xf32>
    %84 = vector.multi_reduction <add>, %83, %cst_27 [1] : vector<8x64xf32> to vector<8xf32>
    %85 = vector.shape_cast %84 : vector<8xf32> to vector<8x1xf32>
    %cst_28 = arith.constant 6.400000e+01 : f32
    %86 = vector.broadcast %cst_28 : f32 to vector<8x1xf32>
    %87 = arith.divf %85, %86 : vector<8x1xf32>
    %88 = vector.broadcast %87 : vector<8x1xf32> to vector<8x64xf32>
    %89 = arith.subf %83, %88 : vector<8x64xf32>
    %90 = arith.mulf %89, %89 : vector<8x64xf32>
    %cst_29 = arith.constant dense<0.000000e+00> : vector<8xf32>
    %91 = vector.multi_reduction <add>, %90, %cst_29 [1] : vector<8x64xf32> to vector<8xf32>
    %92 = vector.shape_cast %91 : vector<8xf32> to vector<8x1xf32>
    %cst_30 = arith.constant 6.400000e+01 : f32
    %93 = vector.broadcast %cst_30 : f32 to vector<8x1xf32>
    %94 = arith.divf %92, %93 : vector<8x1xf32>
    %95 = vector.broadcast %87 : vector<8x1xf32> to vector<8x64xf32>
    %96 = arith.subf %83, %95 : vector<8x64xf32>
    %cst_31 = arith.constant 9.99999996E-13 : f32
    %97 = vector.broadcast %cst_31 : f32 to vector<8x1xf32>
    %98 = arith.addf %94, %97 : vector<8x1xf32>
    %99 = math.rsqrt %98 : vector<8x1xf32>
    %100 = vector.broadcast %99 : vector<8x1xf32> to vector<8x64xf32>
    %101 = arith.mulf %96, %100 : vector<8x64xf32>
    %102 = vector.broadcast %17 : vector<1x64xf32> to vector<8x64xf32>
    %103 = arith.mulf %101, %102 : vector<8x64xf32>
    %104 = vector.broadcast %18 : vector<1x64xf32> to vector<8x64xf32>
    %105 = arith.addf %103, %104 : vector<8x64xf32>
    %106 = arith.truncf %105 : vector<8x64xf32> to vector<8x64xbf16>
    %cst_32 = arith.constant dense<0.000000e+00> : vector<8x128xf32>
    %107 = tpu.matmul %106, %10, %cst_32 {dimension_numbers = #tpu.dot_dimension_numbers<[1], [0], [0], [1], [0, 0, 1, 1], [], []>} : vector<8x64xbf16>, vector<64x128xbf16>, vector<8x128xf32> -> vector<8x128xf32>
    %108 = vector.broadcast %22 : vector<1x128xf32> to vector<8x128xf32>
    %109 = arith.addf %107, %108 : vector<8x128xf32>
    %110 = arith.mulf %109, %109 : vector<8x128xf32>
    %111 = arith.mulf %109, %110 : vector<8x128xf32>
    %cst_33 = arith.constant 4.471500e-02 : f32
    %112 = vector.broadcast %cst_33 : f32 to vector<8x128xf32>
    %113 = arith.mulf %112, %111 : vector<8x128xf32>
    %114 = arith.addf %109, %113 : vector<8x128xf32>
    %cst_34 = arith.constant 0.797884583 : f32
    %115 = vector.broadcast %cst_34 : f32 to vector<8x128xf32>
    %116 = arith.mulf %115, %114 : vector<8x128xf32>
    %117 = math.tanh %116 : vector<8x128xf32>
    %cst_35 = arith.constant 1.000000e+00 : f32
    %118 = vector.broadcast %cst_35 : f32 to vector<8x128xf32>
    %119 = arith.addf %118, %117 : vector<8x128xf32>
    %cst_36 = arith.constant 5.000000e-01 : f32
    %120 = vector.broadcast %cst_36 : f32 to vector<8x128xf32>
    %121 = arith.mulf %120, %119 : vector<8x128xf32>
    %122 = arith.mulf %109, %121 : vector<8x128xf32>
    %123 = arith.truncf %122 : vector<8x128xf32> to vector<8x128xbf16>
    %cst_37 = arith.constant dense<0.000000e+00> : vector<8x64xf32>
    %124 = tpu.matmul %123, %12, %cst_37 {dimension_numbers = #tpu.dot_dimension_numbers<[1], [0], [0], [1], [0, 0, 1, 1], [], []>} : vector<8x128xbf16>, vector<128x64xbf16>, vector<8x64xf32> -> vector<8x64xf32>
    %125 = vector.broadcast %16 : vector<1x64xf32> to vector<8x64xf32>
    %126 = arith.addf %124, %125 : vector<8x64xf32>
    %127 = arith.addf %105, %126 : vector<8x64xf32>
    %cst_38 = arith.constant dense<0.000000e+00> : vector<8xf32>
    %128 = vector.multi_reduction <add>, %127, %cst_38 [1] : vector<8x64xf32> to vector<8xf32>
    %129 = vector.shape_cast %128 : vector<8xf32> to vector<8x1xf32>
    %cst_39 = arith.constant 6.400000e+01 : f32
    %130 = vector.broadcast %cst_39 : f32 to vector<8x1xf32>
    %131 = arith.divf %129, %130 : vector<8x1xf32>
    %132 = vector.broadcast %131 : vector<8x1xf32> to vector<8x64xf32>
    %133 = arith.subf %127, %132 : vector<8x64xf32>
    %134 = arith.mulf %133, %133 : vector<8x64xf32>
    %cst_40 = arith.constant dense<0.000000e+00> : vector<8xf32>
    %135 = vector.multi_reduction <add>, %134, %cst_40 [1] : vector<8x64xf32> to vector<8xf32>
    %136 = vector.shape_cast %135 : vector<8xf32> to vector<8x1xf32>
    %cst_41 = arith.constant 6.400000e+01 : f32
    %137 = vector.broadcast %cst_41 : f32 to vector<8x1xf32>
    %138 = arith.divf %136, %137 : vector<8x1xf32>
    %139 = vector.broadcast %131 : vector<8x1xf32> to vector<8x64xf32>
    %140 = arith.subf %127, %139 : vector<8x64xf32>
    %cst_42 = arith.constant 9.99999996E-13 : f32
    %141 = vector.broadcast %cst_42 : f32 to vector<8x1xf32>
    %142 = arith.addf %138, %141 : vector<8x1xf32>
    %143 = math.rsqrt %142 : vector<8x1xf32>
    %144 = vector.broadcast %143 : vector<8x1xf32> to vector<8x64xf32>
    %145 = arith.mulf %140, %144 : vector<8x64xf32>
    %146 = vector.broadcast %19 : vector<1x64xf32> to vector<8x64xf32>
    %147 = arith.mulf %145, %146 : vector<8x64xf32>
    %148 = vector.broadcast %20 : vector<1x64xf32> to vector<8x64xf32>
    %149 = arith.addf %147, %148 : vector<8x64xf32>
    %c1 = arith.constant 1 : index
    %c0_43 = arith.constant 0 : index
    %c0_44 = arith.constant 0 : index
    %150 = vector.load %arg3[%c1, %c0_43, %c0_44] : memref<2x64x192xbf16, #tpu.memory_space<vmem>>, vector<1x64x192xbf16>
    %151 = vector.shape_cast %150 : vector<1x64x192xbf16> to vector<64x192xbf16>
    %c1_45 = arith.constant 1 : index
    %c0_46 = arith.constant 0 : index
    %c0_47 = arith.constant 0 : index
    %152 = vector.load %arg4[%c1_45, %c0_46, %c0_47] : memref<2x64x64xbf16, #tpu.memory_space<vmem>>, vector<1x64x64xbf16>
    %153 = vector.shape_cast %152 : vector<1x64x64xbf16> to vector<64x64xbf16>
    %c1_48 = arith.constant 1 : index
    %c0_49 = arith.constant 0 : index
    %c0_50 = arith.constant 0 : index
    %154 = vector.load %arg5[%c1_48, %c0_49, %c0_50] : memref<2x64x128xbf16, #tpu.memory_space<vmem>>, vector<1x64x128xbf16>
    %155 = vector.shape_cast %154 : vector<1x64x128xbf16> to vector<64x128xbf16>
    %c1_51 = arith.constant 1 : index
    %c0_52 = arith.constant 0 : index
    %c0_53 = arith.constant 0 : index
    %156 = vector.load %arg6[%c1_51, %c0_52, %c0_53] : memref<2x128x64xbf16, #tpu.memory_space<vmem>>, vector<1x128x64xbf16>
    %157 = vector.shape_cast %156 : vector<1x128x64xbf16> to vector<128x64xbf16>
    %c1_54 = arith.constant 1 : index
    %c0_55 = arith.constant 0 : index
    %c0_56 = arith.constant 0 : index
    %158 = vector.load %arg7[%c1_54, %c0_55, %c0_56] : memref<2x8x192xf32, #tpu.memory_space<vmem>>, vector<1x8x192xf32>
    %159 = vector.shape_cast %158 : vector<1x8x192xf32> to vector<8x192xf32>
    %160 = vector.extract_strided_slice %159 {offsets = [0, 0], sizes = [1, 64], strides = [1, 1]} : vector<8x192xf32> to vector<1x64xf32>
    %161 = vector.extract_strided_slice %159 {offsets = [1, 0], sizes = [1, 64], strides = [1, 1]} : vector<8x192xf32> to vector<1x64xf32>
    %162 = vector.extract_strided_slice %159 {offsets = [2, 0], sizes = [1, 64], strides = [1, 1]} : vector<8x192xf32> to vector<1x64xf32>
    %163 = vector.extract_strided_slice %159 {offsets = [3, 0], sizes = [1, 64], strides = [1, 1]} : vector<8x192xf32> to vector<1x64xf32>
    %164 = vector.extract_strided_slice %159 {offsets = [4, 0], sizes = [1, 64], strides = [1, 1]} : vector<8x192xf32> to vector<1x64xf32>
    %165 = vector.extract_strided_slice %159 {offsets = [5, 0], sizes = [1, 64], strides = [1, 1]} : vector<8x192xf32> to vector<1x64xf32>
    %166 = vector.extract_strided_slice %159 {offsets = [6, 0], sizes = [1, 192], strides = [1, 1]} : vector<8x192xf32> to vector<1x192xf32>
    %167 = vector.extract_strided_slice %159 {offsets = [7, 0], sizes = [1, 128], strides = [1, 1]} : vector<8x192xf32> to vector<1x128xf32>
    %168 = arith.truncf %149 : vector<8x64xf32> to vector<8x64xbf16>
    %cst_57 = arith.constant dense<0.000000e+00> : vector<8x192xf32>
    %169 = tpu.matmul %168, %151, %cst_57 {dimension_numbers = #tpu.dot_dimension_numbers<[1], [0], [0], [1], [0, 0, 1, 1], [], []>} : vector<8x64xbf16>, vector<64x192xbf16>, vector<8x192xf32> -> vector<8x192xf32>
    %170 = vector.broadcast %166 : vector<1x192xf32> to vector<8x192xf32>
    %171 = arith.addf %169, %170 : vector<8x192xf32>
    %172 = vector.extract_strided_slice %171 {offsets = [0, 0], sizes = [8, 16], strides = [1, 1]} : vector<8x192xf32> to vector<8x16xf32>
    %173 = vector.extract_strided_slice %171 {offsets = [0, 16], sizes = [8, 16], strides = [1, 1]} : vector<8x192xf32> to vector<8x16xf32>
    %174 = vector.extract_strided_slice %171 {offsets = [0, 32], sizes = [8, 16], strides = [1, 1]} : vector<8x192xf32> to vector<8x16xf32>
    %175 = vector.extract_strided_slice %171 {offsets = [0, 48], sizes = [8, 16], strides = [1, 1]} : vector<8x192xf32> to vector<8x16xf32>
    %176 = vector.shape_cast %172 : vector<8x16xf32> to vector<1x8x16xf32>
    %177 = vector.shape_cast %173 : vector<8x16xf32> to vector<1x8x16xf32>
    %178 = vector.shape_cast %174 : vector<8x16xf32> to vector<1x8x16xf32>
    %179 = vector.shape_cast %175 : vector<8x16xf32> to vector<1x8x16xf32>
    %180 = tpu.concatenate %176, %177, %178, %179 in 0 : vector<1x8x16xf32>, vector<1x8x16xf32>, vector<1x8x16xf32>, vector<1x8x16xf32> -> vector<4x8x16xf32>
    %181 = vector.extract_strided_slice %171 {offsets = [0, 64], sizes = [8, 16], strides = [1, 1]} : vector<8x192xf32> to vector<8x16xf32>
    %182 = vector.extract_strided_slice %171 {offsets = [0, 80], sizes = [8, 16], strides = [1, 1]} : vector<8x192xf32> to vector<8x16xf32>
    %183 = vector.extract_strided_slice %171 {offsets = [0, 96], sizes = [8, 16], strides = [1, 1]} : vector<8x192xf32> to vector<8x16xf32>
    %184 = vector.extract_strided_slice %171 {offsets = [0, 112], sizes = [8, 16], strides = [1, 1]} : vector<8x192xf32> to vector<8x16xf32>
    %185 = vector.shape_cast %181 : vector<8x16xf32> to vector<1x8x16xf32>
    %186 = vector.shape_cast %182 : vector<8x16xf32> to vector<1x8x16xf32>
    %187 = vector.shape_cast %183 : vector<8x16xf32> to vector<1x8x16xf32>
    %188 = vector.shape_cast %184 : vector<8x16xf32> to vector<1x8x16xf32>
    %189 = tpu.concatenate %185, %186, %187, %188 in 0 : vector<1x8x16xf32>, vector<1x8x16xf32>, vector<1x8x16xf32>, vector<1x8x16xf32> -> vector<4x8x16xf32>
    %190 = vector.extract_strided_slice %171 {offsets = [0, 128], sizes = [8, 16], strides = [1, 1]} : vector<8x192xf32> to vector<8x16xf32>
    %191 = vector.extract_strided_slice %171 {offsets = [0, 144], sizes = [8, 16], strides = [1, 1]} : vector<8x192xf32> to vector<8x16xf32>
    %192 = vector.extract_strided_slice %171 {offsets = [0, 160], sizes = [8, 16], strides = [1, 1]} : vector<8x192xf32> to vector<8x16xf32>
    %193 = vector.extract_strided_slice %171 {offsets = [0, 176], sizes = [8, 16], strides = [1, 1]} : vector<8x192xf32> to vector<8x16xf32>
    %194 = vector.shape_cast %190 : vector<8x16xf32> to vector<1x8x16xf32>
    %195 = vector.shape_cast %191 : vector<8x16xf32> to vector<1x8x16xf32>
    %196 = vector.shape_cast %192 : vector<8x16xf32> to vector<1x8x16xf32>
    %197 = vector.shape_cast %193 : vector<8x16xf32> to vector<1x8x16xf32>
    %198 = tpu.concatenate %194, %195, %196, %197 in 0 : vector<1x8x16xf32>, vector<1x8x16xf32>, vector<1x8x16xf32>, vector<1x8x16xf32> -> vector<4x8x16xf32>
    "tpu.trace_start"() <{level = 10 : i32, message = "hqd,hkd->hqk"}> : () -> ()
    %cst_58 = arith.constant dense<0.000000e+00> : vector<4x8x8xf32>
    %199 = tpu.matmul %180, %189, %cst_58 {dimension_numbers = #tpu.dot_dimension_numbers<[2], [2], [1], [1], [0, 0, 0, 1, 1, 1], [0], [0]>} : vector<4x8x16xf32>, vector<4x8x16xf32>, vector<4x8x8xf32> -> vector<4x8x8xf32>
    "tpu.trace_stop"() : () -> ()
    %cst_59 = arith.constant 2.500000e-01 : f32
    %200 = vector.broadcast %cst_59 : f32 to vector<4x8x8xf32>
    %201 = arith.mulf %199, %200 : vector<4x8x8xf32>
    %202 = arith.addf %201, %4 : vector<4x8x8xf32>
    %cst_60 = arith.constant dense<0xFF800000> : vector<4x8xf32>
    %203 = vector.multi_reduction <maximumf>, %202, %cst_60 [2] : vector<4x8x8xf32> to vector<4x8xf32>
    %cst_61 = arith.constant 0xFF800000 : f32
    %204 = vector.broadcast %cst_61 : f32 to vector<4x8xf32>
    %205 = arith.maximumf %204, %203 : vector<4x8xf32>
    %206 = vector.shape_cast %205 : vector<4x8xf32> to vector<4x8x1xf32>
    %207 = vector.broadcast %206 : vector<4x8x1xf32> to vector<4x8x8xf32>
    %208 = arith.subf %202, %207 : vector<4x8x8xf32>
    %209 = math.exp %208 : vector<4x8x8xf32>
    %cst_62 = arith.constant dense<0.000000e+00> : vector<4x8xf32>
    %210 = vector.multi_reduction <add>, %209, %cst_62 [2] : vector<4x8x8xf32> to vector<4x8xf32>
    %211 = vector.shape_cast %210 : vector<4x8xf32> to vector<4x8x1xf32>
    %212 = vector.broadcast %211 : vector<4x8x1xf32> to vector<4x8x8xf32>
    %213 = arith.divf %209, %212 : vector<4x8x8xf32>
    "tpu.trace_start"() <{level = 10 : i32, message = "hqk,hkd->hqd"}> : () -> ()
    %cst_63 = arith.constant dense<0.000000e+00> : vector<4x8x16xf32>
    %214 = tpu.matmul %213, %198, %cst_63 {dimension_numbers = #tpu.dot_dimension_numbers<[2], [1], [1], [2], [0, 0, 0, 1, 1, 2], [0], [0]>} : vector<4x8x8xf32>, vector<4x8x16xf32>, vector<4x8x16xf32> -> vector<4x8x16xf32>
    "tpu.trace_stop"() : () -> ()
    %215 = vector.extract_strided_slice %214 {offsets = [0, 0, 0], sizes = [1, 8, 16], strides = [1, 1, 1]} : vector<4x8x16xf32> to vector<1x8x16xf32>
    %216 = vector.shape_cast %215 : vector<1x8x16xf32> to vector<8x16xf32>
    %217 = vector.extract_strided_slice %214 {offsets = [1, 0, 0], sizes = [1, 8, 16], strides = [1, 1, 1]} : vector<4x8x16xf32> to vector<1x8x16xf32>
    %218 = vector.shape_cast %217 : vector<1x8x16xf32> to vector<8x16xf32>
    %219 = vector.extract_strided_slice %214 {offsets = [2, 0, 0], sizes = [1, 8, 16], strides = [1, 1, 1]} : vector<4x8x16xf32> to vector<1x8x16xf32>
    %220 = vector.shape_cast %219 : vector<1x8x16xf32> to vector<8x16xf32>
    %221 = vector.extract_strided_slice %214 {offsets = [3, 0, 0], sizes = [1, 8, 16], strides = [1, 1, 1]} : vector<4x8x16xf32> to vector<1x8x16xf32>
    %222 = vector.shape_cast %221 : vector<1x8x16xf32> to vector<8x16xf32>
    %223 = tpu.concatenate %216, %218, %220, %222 in 1 : vector<8x16xf32>, vector<8x16xf32>, vector<8x16xf32>, vector<8x16xf32> -> vector<8x64xf32>
    %224 = arith.truncf %223 : vector<8x64xf32> to vector<8x64xbf16>
    %cst_64 = arith.constant dense<0.000000e+00> : vector<8x64xf32>
    %225 = tpu.matmul %224, %153, %cst_64 {dimension_numbers = #tpu.dot_dimension_numbers<[1], [0], [0], [1], [0, 0, 1, 1], [], []>} : vector<8x64xbf16>, vector<64x64xbf16>, vector<8x64xf32> -> vector<8x64xf32>
    %226 = vector.broadcast %160 : vector<1x64xf32> to vector<8x64xf32>
    %227 = arith.addf %225, %226 : vector<8x64xf32>
    %228 = arith.addf %149, %227 : vector<8x64xf32>
    %cst_65 = arith.constant dense<0.000000e+00> : vector<8xf32>
    %229 = vector.multi_reduction <add>, %228, %cst_65 [1] : vector<8x64xf32> to vector<8xf32>
    %230 = vector.shape_cast %229 : vector<8xf32> to vector<8x1xf32>
    %cst_66 = arith.constant 6.400000e+01 : f32
    %231 = vector.broadcast %cst_66 : f32 to vector<8x1xf32>
    %232 = arith.divf %230, %231 : vector<8x1xf32>
    %233 = vector.broadcast %232 : vector<8x1xf32> to vector<8x64xf32>
    %234 = arith.subf %228, %233 : vector<8x64xf32>
    %235 = arith.mulf %234, %234 : vector<8x64xf32>
    %cst_67 = arith.constant dense<0.000000e+00> : vector<8xf32>
    %236 = vector.multi_reduction <add>, %235, %cst_67 [1] : vector<8x64xf32> to vector<8xf32>
    %237 = vector.shape_cast %236 : vector<8xf32> to vector<8x1xf32>
    %cst_68 = arith.constant 6.400000e+01 : f32
    %238 = vector.broadcast %cst_68 : f32 to vector<8x1xf32>
    %239 = arith.divf %237, %238 : vector<8x1xf32>
    %240 = vector.broadcast %232 : vector<8x1xf32> to vector<8x64xf32>
    %241 = arith.subf %228, %240 : vector<8x64xf32>
    %cst_69 = arith.constant 9.99999996E-13 : f32
    %242 = vector.broadcast %cst_69 : f32 to vector<8x1xf32>
    %243 = arith.addf %239, %242 : vector<8x1xf32>
    %244 = math.rsqrt %243 : vector<8x1xf32>
    %245 = vector.broadcast %244 : vector<8x1xf32> to vector<8x64xf32>
    %246 = arith.mulf %241, %245 : vector<8x64xf32>
    %247 = vector.broadcast %162 : vector<1x64xf32> to vector<8x64xf32>
    %248 = arith.mulf %246, %247 : vector<8x64xf32>
    %249 = vector.broadcast %163 : vector<1x64xf32> to vector<8x64xf32>
    %250 = arith.addf %248, %249 : vector<8x64xf32>
    %251 = arith.truncf %250 : vector<8x64xf32> to vector<8x64xbf16>
    %cst_70 = arith.constant dense<0.000000e+00> : vector<8x128xf32>
    %252 = tpu.matmul %251, %155, %cst_70 {dimension_numbers = #tpu.dot_dimension_numbers<[1], [0], [0], [1], [0, 0, 1, 1], [], []>} : vector<8x64xbf16>, vector<64x128xbf16>, vector<8x128xf32> -> vector<8x128xf32>
    %253 = vector.broadcast %167 : vector<1x128xf32> to vector<8x128xf32>
    %254 = arith.addf %252, %253 : vector<8x128xf32>
    %255 = arith.mulf %254, %254 : vector<8x128xf32>
    %256 = arith.mulf %254, %255 : vector<8x128xf32>
    %cst_71 = arith.constant 4.471500e-02 : f32
    %257 = vector.broadcast %cst_71 : f32 to vector<8x128xf32>
    %258 = arith.mulf %257, %256 : vector<8x128xf32>
    %259 = arith.addf %254, %258 : vector<8x128xf32>
    %cst_72 = arith.constant 0.797884583 : f32
    %260 = vector.broadcast %cst_72 : f32 to vector<8x128xf32>
    %261 = arith.mulf %260, %259 : vector<8x128xf32>
    %262 = math.tanh %261 : vector<8x128xf32>
    %cst_73 = arith.constant 1.000000e+00 : f32
    %263 = vector.broadcast %cst_73 : f32 to vector<8x128xf32>
    %264 = arith.addf %263, %262 : vector<8x128xf32>
    %cst_74 = arith.constant 5.000000e-01 : f32
    %265 = vector.broadcast %cst_74 : f32 to vector<8x128xf32>
    %266 = arith.mulf %265, %264 : vector<8x128xf32>
    %267 = arith.mulf %254, %266 : vector<8x128xf32>
    %268 = arith.truncf %267 : vector<8x128xf32> to vector<8x128xbf16>
    %cst_75 = arith.constant dense<0.000000e+00> : vector<8x64xf32>
    %269 = tpu.matmul %268, %157, %cst_75 {dimension_numbers = #tpu.dot_dimension_numbers<[1], [0], [0], [1], [0, 0, 1, 1], [], []>} : vector<8x128xbf16>, vector<128x64xbf16>, vector<8x64xf32> -> vector<8x64xf32>
    %270 = vector.broadcast %161 : vector<1x64xf32> to vector<8x64xf32>
    %271 = arith.addf %269, %270 : vector<8x64xf32>
    %272 = arith.addf %250, %271 : vector<8x64xf32>
    %cst_76 = arith.constant dense<0.000000e+00> : vector<8xf32>
    %273 = vector.multi_reduction <add>, %272, %cst_76 [1] : vector<8x64xf32> to vector<8xf32>
    %274 = vector.shape_cast %273 : vector<8xf32> to vector<8x1xf32>
    %cst_77 = arith.constant 6.400000e+01 : f32
    %275 = vector.broadcast %cst_77 : f32 to vector<8x1xf32>
    %276 = arith.divf %274, %275 : vector<8x1xf32>
    %277 = vector.broadcast %276 : vector<8x1xf32> to vector<8x64xf32>
    %278 = arith.subf %272, %277 : vector<8x64xf32>
    %279 = arith.mulf %278, %278 : vector<8x64xf32>
    %cst_78 = arith.constant dense<0.000000e+00> : vector<8xf32>
    %280 = vector.multi_reduction <add>, %279, %cst_78 [1] : vector<8x64xf32> to vector<8xf32>
    %281 = vector.shape_cast %280 : vector<8xf32> to vector<8x1xf32>
    %cst_79 = arith.constant 6.400000e+01 : f32
    %282 = vector.broadcast %cst_79 : f32 to vector<8x1xf32>
    %283 = arith.divf %281, %282 : vector<8x1xf32>
    %284 = vector.broadcast %276 : vector<8x1xf32> to vector<8x64xf32>
    %285 = arith.subf %272, %284 : vector<8x64xf32>
    %cst_80 = arith.constant 9.99999996E-13 : f32
    %286 = vector.broadcast %cst_80 : f32 to vector<8x1xf32>
    %287 = arith.addf %283, %286 : vector<8x1xf32>
    %288 = math.rsqrt %287 : vector<8x1xf32>
    %289 = vector.broadcast %288 : vector<8x1xf32> to vector<8x64xf32>
    %290 = arith.mulf %285, %289 : vector<8x64xf32>
    %291 = vector.broadcast %164 : vector<1x64xf32> to vector<8x64xf32>
    %292 = arith.mulf %290, %291 : vector<8x64xf32>
    %293 = vector.broadcast %165 : vector<1x64xf32> to vector<8x64xf32>
    %294 = arith.addf %292, %293 : vector<8x64xf32>
    %295 = vector.extract_strided_slice %294 {offsets = [4, 0], sizes = [1, 64], strides = [1, 1]} : vector<8x64xf32> to vector<1x64xf32>
    %296 = vector.extract_strided_slice %294 {offsets = [5, 0], sizes = [1, 64], strides = [1, 1]} : vector<8x64xf32> to vector<1x64xf32>
    %297 = vector.extract_strided_slice %294 {offsets = [6, 0], sizes = [1, 64], strides = [1, 1]} : vector<8x64xf32> to vector<1x64xf32>
    %298 = vector.extract_strided_slice %294 {offsets = [7, 0], sizes = [1, 64], strides = [1, 1]} : vector<8x64xf32> to vector<1x64xf32>
    %299 = tpu.concatenate %295, %296, %297, %298 in 1 : vector<1x64xf32>, vector<1x64xf32>, vector<1x64xf32>, vector<1x64xf32> -> vector<1x256xf32>
    %300 = arith.truncf %299 : vector<1x256xf32> to vector<1x256xbf16>
    %c0_81 = arith.constant 0 : index
    %c0_82 = arith.constant 0 : index
    %301 = vector.load %arg8[%c0_81, %c0_82] : memref<256x512xbf16, #tpu.memory_space<vmem>>, vector<256x512xbf16>
    %cst_83 = arith.constant dense<0.000000e+00> : vector<1x512xf32>
    %302 = tpu.matmul %300, %301, %cst_83 {dimension_numbers = #tpu.dot_dimension_numbers<[1], [0], [0], [1], [0, 0, 1, 1], [], []>} : vector<1x256xbf16>, vector<256x512xbf16>, vector<1x512xf32> -> vector<1x512xf32>
    %c0_84 = arith.constant 0 : index
    %c0_85 = arith.constant 0 : index
    %303 = vector.load %arg10[%c0_84, %c0_85] : memref<2x512xf32, #tpu.memory_space<vmem>>, vector<1x512xf32>
    %304 = arith.addf %302, %303 : vector<1x512xf32>
    %cst_86 = arith.constant 0.000000e+00 : f32
    %305 = vector.broadcast %cst_86 : f32 to vector<1x512xf32>
    %306 = arith.maximumf %304, %305 : vector<1x512xf32>
    %307 = arith.truncf %306 : vector<1x512xf32> to vector<1x512xbf16>
    %c0_87 = arith.constant 0 : index
    %c0_88 = arith.constant 0 : index
    %308 = vector.load %arg9[%c0_87, %c0_88] : memref<512x128xbf16, #tpu.memory_space<vmem>>, vector<512x128xbf16>
    %cst_89 = arith.constant dense<0.000000e+00> : vector<1x128xf32>
    %309 = tpu.matmul %307, %308, %cst_89 {dimension_numbers = #tpu.dot_dimension_numbers<[1], [0], [0], [1], [0, 0, 1, 1], [], []>} : vector<1x512xbf16>, vector<512x128xbf16>, vector<1x128xf32> -> vector<1x128xf32>
    %c1_90 = arith.constant 1 : index
    %c0_91 = arith.constant 0 : index
    %310 = vector.load %arg10[%c1_90, %c0_91] : memref<2x512xf32, #tpu.memory_space<vmem>>, vector<1x128xf32>
    %311 = arith.addf %309, %310 : vector<1x128xf32>
    %cst_92 = arith.constant 0.000000e+00 : f32
    %312 = vector.broadcast %cst_92 : f32 to vector<1x128xf32>
    %313 = arith.maximumf %311, %312 : vector<1x128xf32>
    %c0_93 = arith.constant 0 : index
    %c0_94 = arith.constant 0 : index
    %c0_95 = arith.constant 0 : index
    %314 = vector.load %arg11[%c0_93, %c0_94, %c0_95] : memref<1x1x128xf32, #tpu.memory_space<vmem>>, vector<1x1x128xf32>
    %315 = vector.shape_cast %314 : vector<1x1x128xf32> to vector<1x128xf32>
    %316 = vector.shape_cast %313 : vector<1x128xf32> to vector<1x1x128xf32>
    tpu.vector_store %arg11[%c0_93, %c0_94, %c0_95], %316 {strides = array<i32>} : memref<1x1x128xf32, #tpu.memory_space<vmem>>, vector<1x1x128xf32>,
    return
  }
  func.func @transform_0(%arg0: i32) -> (i32, i32, i32) {
    %c0_i32 = arith.constant 0 : i32
    %c0_i32_0 = arith.constant 0 : i32
    %c0_i32_1 = arith.constant 0 : i32
    return %arg0, %c0_i32, %c0_i32_0 : i32, i32, i32
  }
  func.func @transform_1(%arg0: i32) -> (i32, i32, i32) {
    %c0_i32 = arith.constant 0 : i32
    %c0_i32_0 = arith.constant 0 : i32
    %c0_i32_1 = arith.constant 0 : i32
    return %arg0, %c0_i32, %c0_i32_0 : i32, i32, i32
  }
  func.func @transform_2(%arg0: i32) -> (i32, i32, i32) {
    %c0_i32 = arith.constant 0 : i32
    %c0_i32_0 = arith.constant 0 : i32
    %c0_i32_1 = arith.constant 0 : i32
    %c0_i32_2 = arith.constant 0 : i32
    return %c0_i32, %c0_i32_0, %c0_i32_1 : i32, i32, i32
  }
  func.func @transform_3(%arg0: i32) -> (i32, i32, i32) {
    %c0_i32 = arith.constant 0 : i32
    %c0_i32_0 = arith.constant 0 : i32
    %c0_i32_1 = arith.constant 0 : i32
    %c0_i32_2 = arith.constant 0 : i32
    return %c0_i32, %c0_i32_0, %c0_i32_1 : i32, i32, i32
  }
  func.func @transform_4(%arg0: i32) -> (i32, i32, i32) {
    %c0_i32 = arith.constant 0 : i32
    %c0_i32_0 = arith.constant 0 : i32
    %c0_i32_1 = arith.constant 0 : i32
    %c0_i32_2 = arith.constant 0 : i32
    return %c0_i32, %c0_i32_0, %c0_i32_1 : i32, i32, i32
  }
  func.func @transform_5(%arg0: i32) -> (i32, i32, i32) {
    %c0_i32 = arith.constant 0 : i32
    %c0_i32_0 = arith.constant 0 : i32
    %c0_i32_1 = arith.constant 0 : i32
    %c0_i32_2 = arith.constant 0 : i32
    return %c0_i32, %c0_i32_0, %c0_i32_1 : i32, i32, i32
  }
  func.func @transform_6(%arg0: i32) -> (i32, i32, i32) {
    %c0_i32 = arith.constant 0 : i32
    %c0_i32_0 = arith.constant 0 : i32
    %c0_i32_1 = arith.constant 0 : i32
    %c0_i32_2 = arith.constant 0 : i32
    return %c0_i32, %c0_i32_0, %c0_i32_1 : i32, i32, i32
  }
  func.func @transform_7(%arg0: i32) -> (i32, i32) {
    %c0_i32 = arith.constant 0 : i32
    %c0_i32_0 = arith.constant 0 : i32
    %c0_i32_1 = arith.constant 0 : i32
    return %c0_i32, %c0_i32_0 : i32, i32
  }
  func.func @transform_8(%arg0: i32) -> (i32, i32) {
    %c0_i32 = arith.constant 0 : i32
    %c0_i32_0 = arith.constant 0 : i32
    %c0_i32_1 = arith.constant 0 : i32
    return %c0_i32, %c0_i32_0 : i32, i32
  }
  func.func @transform_9(%arg0: i32) -> (i32, i32) {
    %c0_i32 = arith.constant 0 : i32
    %c0_i32_0 = arith.constant 0 : i32
    %c0_i32_1 = arith.constant 0 : i32
    return %c0_i32, %c0_i32_0 : i32, i32
  }
  func.func @transform_10(%arg0: i32) -> (i32, i32, i32) {
    %c0_i32 = arith.constant 0 : i32
    %c0_i32_0 = arith.constant 0 : i32
    %c0_i32_1 = arith.constant 0 : i32
    return %arg0, %c0_i32, %c0_i32_0 : i32, i32, i32
  }
}

</mosaic_0001>

<bundles_post_ra>
// kernel: intent_classifier_forward.1
= control target key start
LH: loop header
LB: loop body
LE: loop exit
PB: predicated region body
PF: predicated region fallthrough
CT: control target
= control target key end

     0   :  { %15 = vsyncpa [#allocation3], 0  ;;  %s5303_s0 = inlined_call_operand.vmem [shape: f32[2,8,64], index: 0, kind: input, shape index: {}]   ;;  %s5304_s1 = inlined_call_operand.vmem [shape: f32[2,1,8], index: 1, kind: input, shape index: {}]   ;;  %s5305_s2 = inlined_call_operand.vmem [shape: bf16[2,64,192], index: 2, kind: input, shape index: {}]   ;;  %s5306_s3 = inlined_call_operand.vmem [shape: bf16[2,64,64], index: 3, kind: input, shape index: {}]   ;;  %s5307_s4 = inlined_call_operand.vmem [shape: bf16[2,64,128], index: 4, kind: input, shape index: {}]   ;;  %s5308_s5 = inlined_call_operand.vmem [shape: bf16[2,128,64], index: 5, kind: input, shape index: {}]   ;;  %s5309_s6 = inlined_call_operand.vmem [shape: f32[2,8,192], index: 6, kind: input, shape index: {}]   ;;  %s5310_s7 = inlined_call_operand.vmem [shape: bf16[256,512], index: 7, kind: input, shape index: {}]   ;;  %s5311_s8 = inlined_call_operand.vmem [shape: bf16[512,128], index: 8, kind: input, shape index: {}]   ;;  %s5312_s9 = inlined_call_operand.vmem [shape: f32[2,512], index: 9, kind: input, shape index: {}]   ;;  %s5313_s10 = inlined_call_operand.hbm [shape: f32[2,1,128], index: 10, kind: output, shape index: {}]  }
   0x1   :  { %17 = vsyncpa [#allocation3 + $0x1], 0  ;;  %s4458_s13 = smov 0   ;;  %s4460_s14 = smov 0  }
   0x2   :  { %s4462_s15 = smov 0   ;;  %s4464_s16 = smov 0  }
   0x3 LB: > { %5320 = sst [smem:[#allocation5_spill]] %s4386_s15  ;;  %s4479_s17 = sadd.s32 4294967295, %s4390_s16   ;;  %s4390_s16 = sphi %s4464_s16, %s5332_s16   ;;  %s4386_s15 = sphi %s4462_s15, %s5329_s15   ;;  %s4382_s14 = sphi %s4460_s14, %s5331_s14   ;;  %s4378_s13 = sphi %s4458_s13, %s5330_s13  }
   0x4   : > { %s3539_s18 = sadd.s32 4294967294, %s4390_s16   ;;  %s4483_s19 = sadd.s32 1, %s4390_s16  }
   0x5   : > { %s250_s20 = sadd.s32 1, %s4386_s15  ;;  %s247_s21 = ssub.s32 %s4390_s16, %s4483_s19 }
   0x6   : > { %p260_p0 = scmp.ne.s32.totalorder %s4386_s15, %s4382_s14  ;;  %p248_p1 = scmp.eq.s32.totalorder %s247_s21, 0 }
   0x7   : > { %p261_p2 = scmp.eq.s32.totalorder %s4479_s17, 1  ;;  %p266_p3 = scmp.ne.s32.totalorder %s4382_s14, %s4378_s13 }
   0x8   : > { %p267_p4 = scmp.eq.s32.totalorder %s3539_s18, 1  ;;  %p3542_p7 = scmp.ge.s32.totalorder %s4390_s16, 1 }
   0x9   : > { %s4494_s22 = scalar_select %p248_p1, %s4386_s15, %s250_s20  }
   0xa   : > { %p4496_p5 = por %p261_p2, %p260_p0  ;;  %p4500_p6 = por %p267_p4, %p266_p3 }
   0xb   : > { %5321 = sst [smem:[#allocation6_spill]] %s4494_s22  ;;  %p322_p8 = scmp.lt.s32.totalorder %s4390_s16, 3 }
   0xd   : > { %p323_p9 = pnand %p3542_p7, %p322_p8 }
   0xe   : > { %v4100_v0 = vld [vmem:[%s5305_s2 + $0x4] ss:$8 sps:$4 sm:$0xff] (!%p323_p9)   ;;  %p361_p10 = scmp.lt.s32.totalorder (!%p323_p9), %s4479_s17, 1  ;;  %v4102_v1 = vld [vmem:[%s5305_s2] ss:$8 sps:$4 sm:$0xff] (!%p323_p9)   ;;  %v4392_v2 = vmov (!%p323_p9), 0   ;;  %v420_v11 = vlaneseq (!%p323_p9) }
   0xf   : > { %326 = sbr.rel (%p323_p9) target bundleno = 5896 (0x1708), region = 60  ;;  %504 = vmatprep.mubr.bf16.mxu0 (!%p323_p9), %v4392_v2  ;;  %472 = vmatprep.subr.bf16.mxu0 (!%p323_p9), %v4100_v0  ;;  %v4103_v3 = vld [vmem:[%s5305_s2 + $0x14] ss:$8 sps:$4 sm:$0xff] (!%p323_p9)   ;;  %v4105_v4 = vld [vmem:[%s5305_s2 + $0x10] ss:$8 sps:$4 sm:$0xff] (!%p323_p9)   ;;  %vm468_vm0 = vcmask (!%p323_p9), 523264  }
  0x10   : > { %473 = vmatpush1.bf16.msra.mxu0 (!%p323_p9), %v4102_v1  ;;  %v4106_v5 = vld [vmem:[%s5305_s2 + $0x24] ss:$8 sps:$4 sm:$0xff] (!%p323_p9)   ;;  %v4108_v6 = vld [vmem:[%s5305_s2 + $0x20] ss:$8 sps:$4 sm:$0xff] (!%p323_p9)   ;;  %v4109_v7 = vld [vmem:[%s5305_s2 + $0x34] ss:$8 sps:$4 sm:$0xff] (!%p323_p9)  }
  0x11   : > { %474 = vmatprep.subr.bf16.mxu0 (!%p323_p9), %v4103_v3  ;;  %v4111_v8 = vld [vmem:[%s5305_s2 + $0x30] ss:$8 sps:$4 sm:$0xff] (!%p323_p9)   ;;  %v4544_v12 = vshrl.u32 (!%p323_p9), %v420_v11, 7  ;;  %v4393_v13 = vmov (!%p323_p9), 0.0   ;;  %v4554_v15 = vld [vmem:[%s5309_s6] sm:$0xff] (!%p323_p9)  ;;  %vm4394_vm1 = vmmov (!%p323_p9), 0  }
  0x12   : > { %3878 = vmatprep.subr.mxu1 (!%p323_p9), %v4393_v13  ;;  %3880 = vmatprep.mubr.msk.f32.mxu1 (!%p323_p9), %vm4394_vm1, %v4393_v13  ;;  %s4395_s20 = smov (!%p323_p9), 80   ;;  %s4396_s21 = smov (!%p323_p9), 112   ;;  %vm532_vm2 = vcmask (!%p323_p9), 130048   ;;  %v418_v27 = vld [vmem:[%s5309_s6 + $0x8] sm:$0xff] (!%p323_p9)  ;;  %vm843_vm3 = vcmask (!%p323_p9), 64512   ;;  %vm1193_vm4 = vcmask (!%p323_p9), 261120  }
  0x13   : > { %v4549_v14 = vsub.s32 (!%p323_p9), 6, %v4544_v12  ;;  %s4398_s26 = smov (!%p323_p9), 96   ;;  %s5317_s29 = smov (!%p323_p9), 16   ;;  %vm1195_vm5 = vcmask (!%p323_p9), 392192  }
  0x14   : > { %475 = vmatpush1.bf16.msra.mxu0 (!%p323_p9), %v4105_v4  ;;  %s5316_s30 = smov (!%p323_p9), 32   ;;  %s5315_s18 = smov (!%p323_p9), 48  }
  0x15   : > { %476 = vmatprep.subr.bf16.mxu0 (!%p323_p9), %v4106_v5  ;;  %v423_v16 = vrot.slane (!%p323_p9), %v4554_v15, %v4549_v14  ;;  %v427_v29 = vrot.slane (!%p323_p9), %v418_v27, %v4549_v14 }
  0x16   : > { %s4518_s11 = scalar_select %p361_p10, %s4479_s17, 1 }
  0x18   : > { %s3543_s25 = sshll.u32 %s4518_s11, 3  ;;  %477 = vmatpush1.bf16.msra.mxu0 %v4108_v6  ;;  %s367_s12 = scalar_lea.vmem %s5304_s1, %s4518_s11 }
  0x19   : > { %s364_s15 = scalar_lea.vmem %s5303_s0, %s3543_s25  ;;  %478 = vmatprep.subr.bf16.mxu0 %v4109_v7  ;;  %s5318_s25 = smov 64   ;;  %v4601_v32 = vld [vmem:[%s367_s12] ss:$0 sm:$0xff] }
  0x1a   : > { %v4539_v9 = vld [vmem:[%s364_s15] sm:$0xff]  ;;  %s5327_s12 = smov 48   ;;  %s3761_s11 = sshll.u32 %s4479_s17, 4 }
  0x1b   : > { %v419_v10 = vpack.c.bf16 %v4539_v9, %v4539_v9  ;;  %s4402_s17 = smov [#allocation2]  }
  0x1c   : > { %479 = vmatpush1.bf16.msra.mxu0 %v4111_v8  ;;  %s4332_s27 = sshll.u32 %s4402_s17, 4  ;;  %s4333_s27 = int_to_ptr.vmem [resolvable:$false] %s4332_s27 }
  0x1d   : > { %3903 = vmatprep.subr.mxu0 %v4393_v13  ;;  %s4334_s28 = scalar_lea.vmem %s4333_s27, 32 }
  0x1f   : > { %3553 = vmatmul.mubr.msk.bf16.vlgmr.msra.gmra.mrb[0].mxu0 %vm468_vm0, %v419_v10 }
  0x20   : > { %3905 = vmatprep.mubr.msk.f32.mxu0 %vm4394_vm1, %v4393_v13 }
  0xf2   : > { %v506_v17 = vpop.f32.mrb[0].mxu0 }
  0xf3   : > { %v507_v18 = vadd.f32 %v506_v17, %v423_v16  ;;  %v508_v19 = vpop.f32.mrb[1].mxu0 }
  0xf4   : > { %v510_v20 = vpop.f32.mrb[2].mxu0  ;;  %v4590_v31 = vadd.f32 %v508_v19, %v427_v29 }
  0xf5   : > { %v511_v21 = vpop.f32.mrb[3].mxu0  ;;  %518 = vrot.lane.b32.xlu1 %v507_v18, %s4395_s20  ;;  %514 = vrot.lane.b32.xlu0 %v507_v18, %s4396_s21 }
  0xf9   : > { %530 = vrot.lane.b32.xlu1 %v507_v18, %s5318_s25  ;;  %516 = vrot.lane.b32.xlu0 %v507_v18, %s4398_s26 }
 0x167   : > { %v519_v22 = vpop.permute.xlu1 %518  ;;  %v515_v23 = vpop.permute.xlu0 %514 }
 0x168   : > { %607 = vrot.lane.b32.xlu0 %v515_v23, %s5318_s25 }
 0x16b   : > { %v531_v24 = vpop.permute.xlu1 %530  ;;  %v517_v25 = vpop.permute.xlu0 %516 }
 0x16c   : > { %3879 = vmatpush3.xpose.msk.msra.mxu1 %vm532_vm2, %v531_v24  ;;  %759 = vrot.lane.b32.xlu0 %v519_v22, %s5318_s25 }
 0x16d   : > { %683 = vrot.lane.b32.xlu1 %v517_v25, %s5318_s25  ;;  %3883 = vmatprep.subr.mxu1 %v4393_v13  ;;  %s5325_s25 = smov 16  }
 0x16f   : > { %3881 = vmatmul.mubr.msk.f32.vlgmr.msra.gmra.mrb[0].mxu1 %vm532_vm2, %v507_v18 }
 0x170   : > { %3885 = vmatprep.mubr.msk.f32.mxu1 %vm4394_vm1, %v4393_v13 }
 0x1da   : > { %v608_v26 = vpop.permute.xlu0 %607 }
 0x1db   : > { %3884 = vmatpush3.xpose.msk.msra.mxu1 %vm532_vm2, %v608_v26 }
 0x1dc   : > { %3888 = vmatprep.subr.mxu1 %v4393_v13 }
 0x1de   : > { %3886 = vmatmul.mubr.msk.f32.vlgmr.msra.gmra.mrb[2].mxu1 %vm532_vm2, %v515_v23  ;;  %v760_v30 = vpop.permute.xlu0 %759 }
 0x1df   : > { %v684_v28 = vpop.permute.xlu1 %683  ;;  %3890 = vmatprep.mubr.msk.f32.mxu1 %vm4394_vm1, %v4393_v13 }
 0x1e0   : > { %3889 = vmatpush3.xpose.msk.msra.mxu1 %vm532_vm2, %v684_v28 }
 0x1e1   : > { %3893 = vmatprep.subr.mxu1 %v4393_v13 }
 0x1e3   : > { %3891 = vmatmul.mubr.msk.f32.vlgmr.msra.gmra.mrb[4].mxu1 %vm532_vm2, %v517_v25 }
 0x1e4   : > { %3894 = vmatpush3.xpose.msk.msra.mxu1 %vm532_vm2, %v760_v30  ;;  %3895 = vmatprep.mubr.msk.f32.mxu1 %vm4394_vm1, %v4393_v13 }
 0x1e5   : > { %3898 = vmatprep.subr.mxu1 %v4393_v13 }
 0x1e7   : > { %3896 = vmatmul.mubr.msk.f32.vlgmr.msra.gmra.mrb[6].mxu1 %vm532_vm2, %v519_v22 }
 0x1e8   : > { %3899 = vmatpush3.msra.mxu1 %v4590_v31  ;;  %3900 = vmatprep.mubr.msk.f32.mxu1 %vm4394_vm1, %v4393_v13 }
 0x1e9   : > { %3908 = vmatprep.subr.mxu1 %v4393_v13 }
 0x242   : > { %v603_v33 = vpop.f32.mrb[0].mxu1 }
 0x243   : > { %v835_v34 = vmul.f32 0.25, %v603_v33  ;;  %v3882_v35 = vpop.f32.mrb[1].mxu1  ;;  %v4112_v33 = vld [vmem:[%s5306_s3] sm:$0xff]  }
 0x244   : > { %v4114_v35 = vld [vmem:[%s5306_s3 + $0x10] sm:$0xff]  }
 0x245   : > { %v839_v36 = vadd.f32 %v4601_v32, %v835_v34  ;;  %v4113_v34 = vld [vmem:[%s5306_s3 + $0x8] sm:$0xff]  }
 0x247   : > { %v844_v37 = vsel %vm843_vm3, %v839_v36, -inf }
 0x248   : > { %845 = vmax.xlane.f32.xlu1 %v844_v37 }
 0x2b1   : > { %v679_v38 = vpop.f32.mrb[2].mxu1 }
 0x2b2   : > { %v836_v39 = vmul.f32 0.25, %v679_v38  ;;  %v3887_v40 = vpop.f32.mrb[3].mxu1 }
 0x2b3   : > { %v4115_v40 = vld [vmem:[%s5306_s3 + $0x18] sm:$0xff]  }
 0x2b4   : > { %v840_v41 = vadd.f32 %v4601_v32, %v836_v39 }
 0x2b6   : > { %v755_v42 = vpop.f32.mrb[4].mxu1  ;;  %v847_v43 = vsel %vm843_vm3, %v840_v41, -inf }
 0x2b7   : > { %v837_v44 = vmul.f32 0.25, %v755_v42  ;;  %v3892_v45 = vpop.f32.mrb[5].mxu1  ;;  %848 = vmax.xlane.f32.xlu0 %v847_v43 }
 0x2b9   : > { %v841_v46 = vadd.f32 %v4601_v32, %v837_v44 }
 0x2ba   : > { %v831_v47 = vpop.f32.mrb[6].mxu1 }
 0x2bb   : > { %v838_v48 = vmul.f32 0.25, %v831_v47  ;;  %v3897_v49 = vpop.f32.mrb[7].mxu1  ;;  %v850_v50 = vsel %vm843_vm3, %v841_v46, -inf }
 0x2bc   : > { %851 = vmax.xlane.f32.xlu0 %v850_v50  ;;  %v4662_v50 = vsub.s32 0, %v4544_v12 }
 0x2bd   : > { %v842_v51 = vadd.f32 %v4601_v32, %v838_v48 }
 0x2bf   : > { %v853_v52 = vsel %vm843_vm3, %v842_v51, -inf }
 0x2c0   : > { %854 = vmax.xlane.f32.xlu1 %v853_v52 }
 0x2d5   : > { %v846_v53 = vpop.xlane.xlu1 %845 }
 0x2d6   : > { %v856_v54 = vsub.f32 %v839_v36, %v846_v53 }
 0x2d8   : > { %v860_v55 = vmul.f32 1.442695, %v856_v54 }
 0x2da   : > { %4284 = vpow2.f32 %v860_v55 }
 0x2e4   : > { %v4285_v56 = vpop.eup %4284 }
 0x2e5   : > { %v868_v57 = vsel %vm843_vm3, %v4285_v56, 0.0 }
 0x2e6   : > { %869 = vadd.xlane.f32.xlu0 %v868_v57 }
 0x344   : > { %v849_v58 = vpop.xlane.xlu0 %848 }
 0x345   : > { %v857_v59 = vsub.f32 %v840_v41, %v849_v58 }
 0x347   : > { %v862_v60 = vmul.f32 1.442695, %v857_v59 }
 0x349   : > { %4286 = vpow2.f32 %v862_v60  ;;  %v852_v61 = vpop.xlane.xlu0 %851 }
 0x34a   : > { %v858_v62 = vsub.f32 %v841_v46, %v852_v61 }
 0x34c   : > { %v864_v63 = vmul.f32 1.442695, %v858_v62 }
 0x34d   : > { %v855_v5 = vpop.xlane.xlu1 %854 }
 0x34e   : > { %4288 = vpow2.f32 %v864_v63  ;;  %v859_v7 = vsub.f32 %v842_v51, %v855_v5  ;;  %v1201_v51 = vrot.slane %v4554_v15, %v4662_v50 }
 0x350   : > { %v866_v8 = vmul.f32 1.442695, %v859_v7  ;;  %v4685_v7 = vsub.s32 2, %v4544_v12 }
 0x353   : > { %v4287_v0 = vpop.eup %4286 }
 0x354   : > { %v871_v1 = vsel %vm843_vm3, %v4287_v0, 0.0 }
 0x355   : > { %872 = vadd.xlane.f32.xlu1 %v871_v1  ;;  %v4118_v1 = vld [vmem:[%s5307_s4 + $0x10] sm:$0xff]  }
 0x358   : > { %v4289_v3 = vpop.eup %4288 }
 0x359   : > { %v874_v4 = vsel %vm843_vm3, %v4289_v3, 0.0 }
 0x35a   : > { %875 = vadd.xlane.f32.xlu0 %v874_v4 }
 0x366   : > { %524 = vrot.lane.b32.xlu1 %v4590_v31, %s4398_s26 }
 0x370   : > { %521 = vrot.lane.b32.xlu0 %v4590_v31, %s4396_s21 }
 0x373   : > { %v870_v6 = vpop.xlane.xlu0 %869 }
 0x374   : > { %4290 = vrcp.f32 %v870_v6 }
 0x375   : > { %4292 = vpow2.f32 %v866_v8  ;;  %v4688_v8 = vsub.s32 3, %v4544_v12 }
 0x37e   : > { %v4291_v10 = vpop.eup %4290 }
 0x37f   : > { %v881_v11 = vmul.f32 %v4291_v10, %v4285_v56  ;;  %v4293_v16 = vpop.eup %4292  ;;  %v1287_v10 = vrot.slane %v4554_v15, %v4685_v7 }
 0x380   : > { %v877_v17 = vsel %vm843_vm3, %v4293_v16, 0.0 }
 0x381   : > { %3901 = vmatmul.mubr.msk.f32.vlgmr.msra.gmra.mrb[8].mxu1 %vm843_vm3, %v881_v11 }
 0x382   : > { %3910 = vmatprep.mubr.msk.f32.mxu1 %vm4394_vm1, %v4393_v13 }
 0x38a   : > { %878 = vadd.xlane.f32.xlu1 %v877_v17  ;;  %v1292_v17 = vrot.slane %v4554_v15, %v4688_v8 }
 0x39b   : > { %527 = vrot.lane.b32.xlu1 %v4590_v31, %s4395_s20 }
 0x3e2   : > { %v873_v18 = vpop.xlane.xlu1 %872 }
 0x3e3   : > { %4294 = vrcp.f32 %v873_v18 }
 0x3e6   : > { %v525_v19 = vpop.permute.xlu1 %524 }
 0x3e7   : > { %v876_v20 = vpop.xlane.xlu0 %875  ;;  %3909 = vmatpush3.msra.mxu1 %v525_v19 }
 0x3e8   : > { %4296 = vrcp.f32 %v876_v20  ;;  %3942 = vmatprep.subr.bf16.mxu1 %v4393_v13 }
 0x3eb   : > { %v522_v21 = vpop.permute.xlu0 %521 }
 0x3ec   : > { %3904 = vmatpush3.msra.mxu0 %v522_v21  ;;  %v4120_v21 = vld [vmem:[%s5308_s5] sm:$0xff]  }
 0x3ed   : > { %v4295_v22 = vpop.eup %4294  ;;  %3913 = vmatprep.subr.mxu0 %v4393_v13 }
 0x3ee   : > { %v883_v23 = vmul.f32 %v4295_v22, %v4287_v0  ;;  %v4116_v0 = vld [vmem:[%s5307_s4] sm:$0xff]   ;;  %v4121_v22 = vld [vmem:[%s5308_s5 + $0x8] sm:$0xff]  }
 0x3f0   : > { %3906 = vmatmul.mubr.msk.f32.vlgmr.msra.gmra.mrb[4].mxu0 %vm843_vm3, %v883_v23  ;;  %v4122_v23 = vld [vmem:[%s5308_s5 + $0x10] sm:$0xff]  }
 0x3f1   : > { %3915 = vmatprep.mubr.msk.f32.mxu0 %vm4394_vm1, %v4393_v13 }
 0x3f2   : > { %v4297_v24 = vpop.eup %4296 }
 0x3f3   : > { %v885_v25 = vmul.f32 %v4297_v24, %v4289_v3  ;;  %v4119_v3 = vld [vmem:[%s5307_s4 + $0x18] sm:$0xff]   ;;  %v4124_v24 = vld [vmem:[%s5308_s5 + $0x20] sm:$0xff]  }
 0x3f5   : > { %3911 = vmatmul.mubr.msk.f32.vlgmr.msra.gmra.mrb[10].mxu1 %vm843_vm3, %v885_v25  ;;  %v4125_v25 = vld [vmem:[%s5308_s5 + $0x28] sm:$0xff]  }
 0x3f6   : > { %3958 = vmatprep.mubr.msk.bf16.mxu1 %vm4394_vm1, %v4393_v13  ;;  %3943 = vmatpush3.bf16.msra.mxu1 %v4120_v21 }
 0x3f7   : > { %3944 = vmatprep.subr.bf16.mxu1 %v4393_v13 }
 0x3fa   : > { %3945 = vmatpush3.bf16.msra.mxu1 %v4121_v22 }
 0x3fb   : > { %3946 = vmatprep.subr.bf16.mxu1 %v4393_v13 }
 0x3fe   : > { %3947 = vmatpush3.bf16.msra.mxu1 %v4122_v23 }
 0x3ff   : > { %3948 = vmatprep.subr.bf16.mxu1 %v4393_v13 }
 0x417   : > { %v879_v26 = vpop.xlane.xlu1 %878 }
 0x418   : > { %4298 = vrcp.f32 %v879_v26  ;;  %v4126_v26 = vld [vmem:[%s5308_s5 + $0x30] sm:$0xff]  }
 0x41b   : > { %v528_v27 = vpop.permute.xlu1 %527 }
 0x41c   : > { %3914 = vmatpush3.msra.mxu0 %v528_v27  ;;  %v4127_v27 = vld [vmem:[%s5308_s5 + $0x38] sm:$0xff]  }
 0x41d   : > { %3918 = vmatprep.subr.bf16.mxu0 %v4393_v13 }
 0x422   : > { %v4299_v28 = vpop.eup %4298 }
 0x423   : > { %v887_v29 = vmul.f32 %v4299_v28, %v4293_v16  ;;  %v1297_v28 = vsub.s32 7, %v4544_v12 }
 0x425   : > { %3916 = vmatmul.mubr.msk.f32.vlgmr.msra.gmra.mrb[6].mxu0 %vm843_vm3, %v887_v29  ;;  %v1298_v29 = vrot.slane %v4554_v15, %v1297_v28 }
 0x426   : > { %3926 = vmatprep.mubr.msk.bf16.mxu0 %vm4394_vm1, %v4393_v13  ;;  %3919 = vmatpush3.bf16.msra.mxu0 %v4112_v33 }
 0x427   : > { %3920 = vmatprep.subr.bf16.mxu0 %v4393_v13 }
 0x42a   : > { %3921 = vmatpush3.bf16.msra.mxu0 %v4113_v34 }
 0x42b   : > { %3922 = vmatprep.subr.bf16.mxu0 %v4393_v13 }
 0x42e   : > { %3923 = vmatpush3.bf16.msra.mxu0 %v4114_v35 }
 0x42f   : > { %3924 = vmatprep.subr.bf16.mxu0 %v4393_v13 }
 0x432   : > { %3925 = vmatpush3.bf16.msra.mxu0 %v4115_v40 }
 0x433   : > { %3930 = vmatprep.subr.bf16.mxu0 %v4393_v13 }
 0x454   : > { %v957_v30 = vpop.f32.mrb[8].mxu1 }
 0x455   : > { %v3902_v31 = vpop.f32.mrb[9].mxu1 }
 0x4c3   : > { %v1030_v36 = vpop.f32.mrb[4].mxu0 }
 0x4c4   : > { %1181 = vrot.lane.b32.xlu0 %v1030_v36, %s5317_s29  ;;  %v3907_v37 = vpop.f32.mrb[5].mxu0  ;;  %s5326_s29 = smov 32  }
 0x4c8   : > { %v1103_v38 = vpop.f32.mrb[10].mxu1 }
 0x4c9   : > { %1185 = vrot.lane.b32.xlu1 %v1103_v38, %s5316_s30  ;;  %v3912_v39 = vpop.f32.mrb[11].mxu1  ;;  %s5324_s30 = smov 64  }
 0x4f8   : > { %v1176_v41 = vpop.f32.mrb[6].mxu0 }
 0x4f9   : > { %1189 = vrot.lane.b32.xlu0 %v1176_v41, %s5315_s18  ;;  %v3917_v42 = vpop.f32.mrb[7].mxu0  ;;  %s5261_s18 = scalar_lea.hbm %s5313_s10, %s3761_s11 }
 0x536   : > { %v1182_v43 = vpop.permute.xlu0 %1181 }
 0x537   : > { %v1192_v45 = vsel %vm532_vm2, %v957_v30, %v1182_v43 }
 0x53b   : > { %v1186_v44 = vpop.permute.xlu1 %1185 }
 0x53c   : > { %v1194_v46 = vsel %vm1193_vm4, %v1192_v45, %v1186_v44 }
 0x56b   : > { %v1190_v47 = vpop.permute.xlu0 %1189 }
 0x56c   : > { %v1196_v48 = vsel %vm1195_vm5, %v1194_v46, %v1190_v47  ;;  %v4735_v46 = vsub.s32 1, %v4544_v12 }
 0x56d   : > { %v1197_v49 = vpack.c.bf16 %v1196_v48, %v1196_v48 }
 0x56e   : > { %v1379_v47 = vrot.slane %v4554_v15, %v4735_v46 }
 0x56f   : > { %3927 = vmatmul.mubr.msk.bf16.vlgmr.msra.gmra.mrb[8].mxu0 %vm468_vm0, %v1197_v49 }
 0x570   : > { %3938 = vmatprep.mubr.msk.bf16.mxu0 %vm4394_vm1, %v4393_v13  ;;  %3931 = vmatpush3.bf16.msra.mxu0 %v4116_v0  ;;  %v4131_v0 = vld [vmem:[%s5305_s2 + $0x50] ss:$8 sps:$4 sm:$0xff]  }
 0x571   : > { %3932 = vmatprep.subr.bf16.mxu0 %v4393_v13 }
 0x642   : > { %v1263_v52 = vpop.f32.mrb[8].mxu0 }
 0x643   : > { %v1264_v53 = vadd.f32 %v1263_v52, %v1201_v51  ;;  %v3928_v54 = vpop.f32.mrb[9].mxu0 }
 0x644   : > { %v1266_v55 = vpop.f32.mrb[10].mxu0 }
 0x645   : > { %v3929_v56 = vpop.f32.mrb[11].mxu0  ;;  %v1269_v57 = vadd.f32 %v1264_v53, %v4539_v9  ;;  %v4117_v9 = vld [vmem:[%s5307_s4 + $0x8] sm:$0xff]  }
 0x646   : > { %3933 = vmatpush3.bf16.msra.mxu0 %v4117_v9  ;;  %v4136_v9 = vld [vmem:[%s5305_s2 + $0x64] ss:$8 sps:$4 sm:$0xff]  }
 0x647   : > { %v1270_v58 = vsel %vm468_vm0, %v1269_v57, 0.0  ;;  %3934 = vmatprep.subr.bf16.mxu0 %v4393_v13 }
 0x648   : > { %1271 = vadd.xlane.f32.xlu1 %v1270_v58 }
 0x64a   : > { %3935 = vmatpush3.bf16.msra.mxu0 %v4118_v1  ;;  %v4134_v1 = vld [vmem:[%s5305_s2 + $0x60] ss:$8 sps:$4 sm:$0xff]  }
 0x64b   : > { %3936 = vmatprep.subr.bf16.mxu0 %v4393_v13 }
 0x64e   : > { %3937 = vmatpush3.bf16.msra.mxu0 %v4119_v3  ;;  %v4137_v3 = vld [vmem:[%s5305_s2 + $0x70] ss:$8 sps:$4 sm:$0xff]  }
 0x6d5   : > { %v1272_v59 = vpop.xlane.xlu1 %1271 }
 0x6d6   : > { %v1274_v60 = vmul.f32 0.015625, %v1272_v59 }
 0x6d8   : > { %v1275_v61 = vsub.f32 %v1269_v57, %v1274_v60 }
 0x6da   : > { %v1276_v62 = vmul.f32 %v1275_v61, %v1275_v61 }
 0x6dc   : > { %v1277_v63 = vsel %vm468_vm0, %v1276_v62, 0.0  ;;  %v4128_v62 = vld [vmem:[%s5305_s2 + $0x40] ss:$8 sps:$4 sm:$0xff]  }
 0x6dd   : > { %1278 = vadd.xlane.f32.xlu0 %v1277_v63  ;;  %v4133_v63 = vld [vmem:[%s5305_s2 + $0x54] ss:$8 sps:$4 sm:$0xff]  }
 0x76a   : > { %v1279_v4 = vpop.xlane.xlu0 %1278 }
 0x76b   : > { %v1280_v5 = vmul.f32 0.015625, %v1279_v4  ;;  %v4139_v4 = vld [vmem:[%s5305_s2 + $0x74] ss:$8 sps:$4 sm:$0xff]  }
 0x76d   : > { %v1281_v6 = vadd.f32 1e-12, %v1280_v5 }
 0x76f   : > { %4300 = vrsqrt.f32 %v1281_v6 }
 0x779   : > { %v4301_v11 = vpop.eup %4300 }
 0x77a   : > { %v1283_v16 = vmul.f32 %v4301_v11, %v1275_v61  ;;  %v4130_v61 = vld [vmem:[%s5305_s2 + $0x44] ss:$8 sps:$4 sm:$0xff]   ;;  %v1484_v11 = vsub.s32 4, %v4544_v12 }
 0x77b   : > { %1591 = vmatprep.subr.bf16.mxu0 %v4130_v61 }
 0x77c   : > { %v1288_v18 = vmul.f32 %v1287_v10, %v1283_v16  ;;  %v1489_v16 = vsub.s32 5, %v4544_v12 }
 0x77e   : > { %v1293_v19 = vadd.f32 %v1292_v17, %v1288_v18  ;;  %v1485_v17 = vrot.slane %v4554_v15, %v1484_v11 }
 0x780   : > { %v1294_v20 = vpack.c.bf16 %v1293_v19, %v1293_v19 }
 0x782   : > { %3939 = vmatmul.mubr.msk.bf16.vlgmr.msra.gmra.mrb[12].mxu0 %vm468_vm0, %v1294_v20  ;;  %v1490_v20 = vrot.slane %v4554_v15, %v1489_v16  ;;  %v3625_v15 = vld [vmem:[%s5309_s6 + $0x18] sm:$0xff] }
 0x783   : > { %1623 = vmatprep.mubr.bf16.mxu0 %v4392_v2  ;;  %v4123_v2 = vld [vmem:[%s5308_s5 + $0x18] sm:$0xff]   ;;  %1592 = vmatpush1.bf16.msra.mxu0 %v4128_v62 }
 0x784   : > { %3949 = vmatpush3.bf16.msra.mxu1 %v4123_v2  ;;  %1593 = vmatprep.subr.bf16.mxu0 %v4133_v63  ;;  %v4784_v2 = vld [vmem:[%s5309_s6 + $0x10] sm:$0xff] }
 0x785   : > { %3950 = vmatprep.subr.bf16.mxu1 %v4393_v13 }
 0x787   : > { %1594 = vmatpush1.bf16.msra.mxu0 %v4131_v0 }
 0x788   : > { %3951 = vmatpush3.bf16.msra.mxu1 %v4124_v24  ;;  %1595 = vmatprep.subr.bf16.mxu0 %v4136_v9  ;;  %v1543_v24 = vrot.slane %v4784_v2, %v4549_v14 }
 0x789   : > { %3952 = vmatprep.subr.bf16.mxu1 %v4393_v13 }
 0x78b   : > { %1596 = vmatpush1.bf16.msra.mxu0 %v4134_v1 }
 0x78c   : > { %3953 = vmatpush3.bf16.msra.mxu1 %v4125_v25  ;;  %1597 = vmatprep.subr.bf16.mxu0 %v4139_v4  ;;  %v1547_v25 = vrot.slane %v3625_v15, %v4549_v14 }
 0x78d   : > { %3954 = vmatprep.subr.bf16.mxu1 %v4393_v13 }
 0x78f   : > { %1598 = vmatpush1.bf16.msra.mxu0 %v4137_v3 }
 0x790   : > { %3955 = vmatpush3.bf16.msra.mxu1 %v4126_v26  ;;  %3962 = vmatprep.subr.mxu0 %v4393_v13 }
 0x791   : > { %3956 = vmatprep.subr.bf16.mxu1 %v4393_v13 }
 0x794   : > { %3957 = vmatpush3.bf16.msra.mxu1 %v4127_v27 }
 0x795   : > { %3982 = vmatprep.subr.mxu1 %v4393_v13 }
 0x855   : > { %v1360_v30 = vpop.f32.mrb[12].mxu0 }
 0x856   : > { %v1361_v31 = vadd.f32 %v1360_v30, %v1298_v29  ;;  %v3940_v33 = vpop.f32.mrb[13].mxu0 }
 0x857   : > { %v1363_v34 = vpop.f32.mrb[14].mxu0 }
 0x858   : > { %v1366_v35 = vmul.f32 %v1361_v31, %v1361_v31  ;;  %v3941_v36 = vpop.f32.mrb[15].mxu0 }
 0x85a   : > { %v1367_v37 = vmul.f32 %v1366_v35, %v1361_v31 }
 0x85c   : > { %v1368_v38 = vmul.f32 0.044715, %v1367_v37 }
 0x85e   : > { %v1369_v39 = vadd.f32 %v1368_v38, %v1361_v31 }
 0x860   : > { %v1370_v40 = vmul.f32 0.7978846, %v1369_v39 }
 0x862   : > { %4302 = vtanh.f32 %v1370_v40 }
 0x86c   : > { %v4303_v41 = vpop.eup %4302 }
 0x86d   : > { %v1372_v42 = vadd.f32 1.0, %v4303_v41 }
 0x86f   : > { %v1373_v43 = vmul.f32 0.5, %v1372_v42 }
 0x871   : > { %v1374_v44 = vmul.f32 %v1373_v43, %v1361_v31 }
 0x873   : > { %v1375_v45 = vpack.c.bf16 %v1374_v44, %v1374_v44 }
 0x875   : > { %3959 = vmatmul.mubr.bf16.vlgmr.msra.gmra.mrb[12].mxu1 %v1375_v45 }
 0x876   : > { %3984 = vmatprep.mubr.msk.f32.mxu1 %vm4394_vm1, %v4393_v13 }
 0x948   : > { %v1462_v48 = vpop.f32.mrb[12].mxu1 }
 0x949   : > { %v1463_v49 = vadd.f32 %v1462_v48, %v1379_v47  ;;  %v3960_v51 = vpop.f32.mrb[13].mxu1 }
 0x94a   : > { %v1465_v52 = vpop.f32.mrb[14].mxu1 }
 0x94b   : > { %v3961_v53 = vpop.f32.mrb[15].mxu1  ;;  %v1468_v54 = vadd.f32 %v1463_v49, %v1293_v19 }
 0x94d   : > { %v1469_v55 = vsel %vm468_vm0, %v1468_v54, 0.0 }
 0x94e   : > { %1470 = vadd.xlane.f32.xlu0 %v1469_v55 }
 0x9db   : > { %v1471_v56 = vpop.xlane.xlu0 %1470 }
 0x9dc   : > { %v1472_v57 = vmul.f32 0.015625, %v1471_v56 }
 0x9de   : > { %v1473_v58 = vsub.f32 %v1468_v54, %v1472_v57 }
 0x9e0   : > { %v1474_v59 = vmul.f32 %v1473_v58, %v1473_v58 }
 0x9e2   : > { %v1475_v60 = vsel %vm468_vm0, %v1474_v59, 0.0 }
 0x9e3   : > { %1476 = vadd.xlane.f32.xlu1 %v1475_v60 }
 0xa70   : > { %v1477_v5 = vpop.xlane.xlu1 %1476 }
 0xa71   : > { %v1478_v6 = vmul.f32 0.015625, %v1477_v5 }
 0xa73   : > { %v1479_v10 = vadd.f32 1e-12, %v1478_v6 }
 0xa75   : > { %4304 = vrsqrt.f32 %v1479_v10 }
 0xa7f   : > { %v4305_v18 = vpop.eup %4304 }
 0xa80   : > { %v1481_v19 = vmul.f32 %v4305_v18, %v1473_v58 }
 0xa82   : > { %v1486_v21 = vmul.f32 %v1485_v17, %v1481_v19 }
 0xa84   : > { %v4774_v22 = vadd.f32 %v1490_v20, %v1486_v21 }
 0xa86   : > { %v1539_v23 = vpack.c.bf16 %v4774_v22, %v4774_v22 }
 0xa88   : > { %3634 = vmatmul.mubr.msk.bf16.vlgmr.msra.gmra.mrb[16].mxu0 %vm468_vm0, %v1539_v23 }
 0xa89   : > { %3964 = vmatprep.mubr.msk.f32.mxu0 %vm4394_vm1, %v4393_v13 }
 0xb5b   : > { %v1625_v26 = vpop.f32.mrb[16].mxu0 }
 0xb5c   : > { %v1626_v27 = vadd.f32 %v1625_v26, %v1543_v24  ;;  %v1627_v29 = vpop.f32.mrb[17].mxu0 }
 0xb5d   : > { %v4792_v30 = vadd.f32 %v1627_v29, %v1547_v25  ;;  %v1629_v31 = vpop.f32.mrb[18].mxu0 }
 0xb5e   : > { %v1630_v33 = vpop.f32.mrb[19].mxu0  ;;  %1635 = vrot.lane.b32.xlu1 %v1626_v27, %s4398_s26  ;;  %1633 = vrot.lane.b32.xlu0 %v1626_v27, %s4396_s21 }
 0xb5f   : > { %3983 = vmatpush3.msra.mxu1 %v4792_v30 }
 0xb60   : > { %3992 = vmatprep.subr.mxu1 %v4393_v13 }
 0xb62   : > { %1637 = vrot.lane.b32.xlu1 %v1626_v27, %s4395_s20  ;;  %1649 = vrot.lane.b32.xlu0 %v1626_v27, %s5324_s30 }
 0xbd0   : > { %v1636_v14 = vpop.permute.xlu1 %1635  ;;  %v1634_v34 = vpop.permute.xlu0 %1633 }
 0xbd1   : > { %1801 = vrot.lane.b32.xlu0 %v1636_v14, %s5324_s30  ;;  %1725 = vrot.lane.b32.xlu1 %v1634_v34, %s5324_s30 }
 0xbd4   : > { %v1638_v35 = vpop.permute.xlu1 %1637  ;;  %v1650_v36 = vpop.permute.xlu0 %1649 }
 0xbd5   : > { %1877 = vrot.lane.b32.xlu1 %v1638_v35, %s5324_s30  ;;  %3963 = vmatpush3.xpose.msk.msra.mxu0 %vm532_vm2, %v1650_v36 }
 0xbd6   : > { %3967 = vmatprep.subr.mxu0 %v4393_v13 }
 0xbd8   : > { %3965 = vmatmul.mubr.msk.f32.vlgmr.msra.gmra.mrb[20].mxu0 %vm532_vm2, %v1626_v27 }
 0xbd9   : > { %3969 = vmatprep.mubr.msk.f32.mxu0 %vm4394_vm1, %v4393_v13 }
 0xc43   : > { %v1726_v37 = vpop.permute.xlu1 %1725  ;;  %v1802_v38 = vpop.permute.xlu0 %1801 }
 0xc44   : > { %3968 = vmatpush3.xpose.msk.msra.mxu0 %vm532_vm2, %v1726_v37 }
 0xc45   : > { %3972 = vmatprep.subr.mxu0 %v4393_v13 }
 0xc47   : > { %3970 = vmatmul.mubr.msk.f32.vlgmr.msra.gmra.mrb[22].mxu0 %vm532_vm2, %v1634_v34  ;;  %v1878_v39 = vpop.permute.xlu1 %1877 }
 0xc48   : > { %3973 = vmatpush3.xpose.msk.msra.mxu0 %vm532_vm2, %v1802_v38  ;;  %3974 = vmatprep.mubr.msk.f32.mxu0 %vm4394_vm1, %v4393_v13 }
 0xc49   : > { %3977 = vmatprep.subr.mxu0 %v4393_v13 }
 0xc4b   : > { %3975 = vmatmul.mubr.msk.f32.vlgmr.msra.gmra.mrb[24].mxu0 %vm532_vm2, %v1636_v14 }
 0xc4c   : > { %3978 = vmatpush3.xpose.msk.msra.mxu0 %vm532_vm2, %v1878_v39  ;;  %3979 = vmatprep.mubr.msk.f32.mxu0 %vm4394_vm1, %v4393_v13 }
 0xc4d   : > { %3987 = vmatprep.subr.mxu0 %v4393_v13 }
 0xc4f   : > { %3980 = vmatmul.mubr.msk.f32.vlgmr.msra.gmra.mrb[26].mxu0 %vm532_vm2, %v1638_v35 }
 0xc50   : > { %3989 = vmatprep.mubr.msk.f32.mxu0 %vm4394_vm1, %v4393_v13 }
 0xcab   : > { %v1721_v40 = vpop.f32.mrb[20].mxu0 }
 0xcac   : > { %v1953_v41 = vmul.f32 0.25, %v1721_v40  ;;  %v3966_v42 = vpop.f32.mrb[21].mxu0 }
 0xcad   : > { %v4140_v42 = vld [vmem:[%s5306_s3 + $0x20] sm:$0xff]  }
 0xcae   : > { %v1957_v43 = vadd.f32 %v4601_v32, %v1953_v41 }
 0xcb0   : > { %v1961_v44 = vsel %vm843_vm3, %v1957_v43, -inf }
 0xcb1   : > { %1962 = vmax.xlane.f32.xlu0 %v1961_v44 }
 0xd1a   : > { %v1797_v45 = vpop.f32.mrb[22].mxu0 }
 0xd1b   : > { %v1954_v47 = vmul.f32 0.25, %v1797_v45  ;;  %v3971_v48 = vpop.f32.mrb[23].mxu0  ;;  %v4141_v45 = vld [vmem:[%s5306_s3 + $0x28] sm:$0xff]  }
 0xd1c   : > { %v4143_v48 = vld [vmem:[%s5306_s3 + $0x38] sm:$0xff]  }
 0xd1d   : > { %v1958_v49 = vadd.f32 %v4601_v32, %v1954_v47  ;;  %v4142_v47 = vld [vmem:[%s5306_s3 + $0x30] sm:$0xff]  }
 0xd1e   : > { %v1873_v51 = vpop.f32.mrb[24].mxu0 }
 0xd1f   : > { %v1955_v52 = vmul.f32 0.25, %v1873_v51  ;;  %v3976_v53 = vpop.f32.mrb[25].mxu0  ;;  %v1964_v54 = vsel %vm843_vm3, %v1958_v49, -inf }
 0xd20   : > { %1965 = vmax.xlane.f32.xlu1 %v1964_v54 }
 0xd21   : > { %v1959_v55 = vadd.f32 %v4601_v32, %v1955_v52 }
 0xd22   : > { %v1949_v56 = vpop.f32.mrb[26].mxu0 }
 0xd23   : > { %v1956_v57 = vmul.f32 0.25, %v1949_v56  ;;  %v3981_v58 = vpop.f32.mrb[27].mxu0  ;;  %v1967_v59 = vsel %vm843_vm3, %v1959_v55, -inf }
 0xd24   : > { %1968 = vmax.xlane.f32.xlu0 %v1967_v59 }
 0xd25   : > { %v1960_v60 = vadd.f32 %v4601_v32, %v1956_v57 }
 0xd27   : > { %v1970_v61 = vsel %vm843_vm3, %v1960_v60, -inf }
 0xd28   : > { %1971 = vmax.xlane.f32.xlu0 %v1970_v61 }
 0xd31   : > { %1640 = vrot.lane.b32.xlu1 %v4792_v30, %s4396_s21 }
 0xd3e   : > { %v1963_v62 = vpop.xlane.xlu0 %1962 }
 0xd3f   : > { %v1973_v63 = vsub.f32 %v1957_v43, %v1963_v62 }
 0xd41   : > { %v1977_v0 = vmul.f32 1.442695, %v1973_v63  ;;  %v2316_v63 = vrot.slane %v4784_v2, %v4662_v50 }
 0xd43   : > { %4306 = vpow2.f32 %v1977_v0 }
 0xd4d   : > { %v4307_v9 = vpop.eup %4306 }
 0xd4e   : > { %v1985_v1 = vsel %vm843_vm3, %v4307_v9, 0.0 }
 0xd55   : > { %1986 = vadd.xlane.f32.xlu1 %v1985_v1 }
 0xdad   : > { %v1966_v3 = vpop.xlane.xlu1 %1965 }
 0xdae   : > { %v1974_v4 = vsub.f32 %v1958_v49, %v1966_v3 }
 0xdb0   : > { %v1979_v5 = vmul.f32 1.442695, %v1974_v4 }
 0xdb1   : > { %v1641_v6 = vpop.permute.xlu1 %1640  ;;  %v1969_v10 = vpop.xlane.xlu0 %1968 }
 0xdb2   : > { %4308 = vpow2.f32 %v1979_v5  ;;  %v1975_v32 = vsub.f32 %v1959_v55, %v1969_v10  ;;  %3988 = vmatpush3.msra.mxu0 %v1641_v6 }
 0xdb3   : > { %3997 = vmatprep.subr.mxu0 %v4393_v13 }
 0xdb4   : > { %v1981_v17 = vmul.f32 1.442695, %v1975_v32 }
 0xdb5   : > { %v1972_v18 = vpop.xlane.xlu0 %1971 }
 0xdb6   : > { %4310 = vpow2.f32 %v1981_v17  ;;  %v1976_v19 = vsub.f32 %v1960_v60, %v1972_v18 }
 0xdb8   : > { %v1983_v20 = vmul.f32 1.442695, %v1976_v19 }
 0xdba   : > { %4312 = vpow2.f32 %v1983_v20  ;;  %v4144_v20 = vld [vmem:[%s5307_s4 + $0x20] sm:$0xff]  }
 0xdbc   : > { %v4309_v21 = vpop.eup %4308 }
 0xdbd   : > { %v1988_v23 = vsel %vm843_vm3, %v4309_v21, 0.0 }
 0xdbe   : > { %1989 = vadd.xlane.f32.xlu0 %v1988_v23  ;;  %v4147_v23 = vld [vmem:[%s5307_s4 + $0x38] sm:$0xff]  }
 0xdc0   : > { %v4311_v15 = vpop.eup %4310 }
 0xdc1   : > { %v1991_v24 = vsel %vm843_vm3, %v4311_v15, 0.0 }
 0xdc2   : > { %1992 = vadd.xlane.f32.xlu1 %v1991_v24 }
 0xdc4   : > { %v4313_v25 = vpop.eup %4312 }
 0xdc5   : > { %v1994_v26 = vsel %vm843_vm3, %v4313_v25, 0.0 }
 0xdc6   : > { %1995 = vadd.xlane.f32.xlu0 %v1994_v26  ;;  %v2401_v26 = vrot.slane %v4784_v2, %v4685_v7 }
 0xdd3   : > { %1646 = vrot.lane.b32.xlu1 %v4792_v30, %s4395_s20 }
 0xddc   : > { %1643 = vrot.lane.b32.xlu0 %v4792_v30, %s4398_s26 }
 0xde2   : > { %v1987_v27 = vpop.xlane.xlu1 %1986 }
 0xde3   : > { %4314 = vrcp.f32 %v1987_v27 }
 0xded   : > { %v4315_v29 = vpop.eup %4314 }
 0xdee   : > { %v1998_v31 = vmul.f32 %v4315_v29, %v4307_v9 }
 0xdf0   : > { %3985 = vmatmul.mubr.msk.f32.vlgmr.msra.gmra.mrb[16].mxu1 %vm843_vm3, %v1998_v31  ;;  %v2406_v31 = vrot.slane %v4784_v2, %v4688_v8 }
 0xdf1   : > { %3994 = vmatprep.mubr.msk.f32.mxu1 %vm4394_vm1, %v4393_v13 }
 0xe4b   : > { %v1990_v33 = vpop.xlane.xlu0 %1989 }
 0xe4c   : > { %4316 = vrcp.f32 %v1990_v33 }
 0xe4f   : > { %v1993_v14 = vpop.xlane.xlu1 %1992 }
 0xe50   : > { %4318 = vrcp.f32 %v1993_v14 }
 0xe53   : > { %v1996_v34 = vpop.xlane.xlu0 %1995  ;;  %v1647_v30 = vpop.permute.xlu1 %1646 }
 0xe54   : > { %4320 = vrcp.f32 %v1996_v34 }
 0xe56   : > { %v4317_v35 = vpop.eup %4316 }
 0xe57   : > { %v2000_v36 = vmul.f32 %v4317_v35, %v4309_v21  ;;  %v1644_v37 = vpop.permute.xlu0 %1643  ;;  %v4146_v21 = vld [vmem:[%s5307_s4 + $0x30] sm:$0xff]   ;;  %v4148_v35 = vld [vmem:[%s5308_s5 + $0x40] sm:$0xff]  }
 0xe58   : > { %3993 = vmatpush3.msra.mxu1 %v1644_v37  ;;  %v4150_v37 = vld [vmem:[%s5308_s5 + $0x50] sm:$0xff]  }
 0xe59   : > { %3990 = vmatmul.mubr.msk.f32.vlgmr.msra.gmra.mrb[28].mxu0 %vm843_vm3, %v2000_v36  ;;  %4002 = vmatprep.subr.bf16.mxu1 %v4393_v13  ;;  %v4149_v36 = vld [vmem:[%s5308_s5 + $0x48] sm:$0xff]  }
 0xe5a   : > { %v4319_v38 = vpop.eup %4318  ;;  %3998 = vmatpush3.msra.mxu0 %v1647_v30  ;;  %3999 = vmatprep.mubr.msk.f32.mxu0 %vm4394_vm1, %v4393_v13  ;;  %v4151_v30 = vld [vmem:[%s5308_s5 + $0x58] sm:$0xff]  }
 0xe5b   : > { %v2002_v39 = vmul.f32 %v4319_v38, %v4311_v15  ;;  %4014 = vmatprep.subr.bf16.mxu0 %v4393_v13  ;;  %v4152_v38 = vld [vmem:[%s5308_s5 + $0x60] sm:$0xff]  }
 0xe5d   : > { %3995 = vmatmul.mubr.msk.f32.vlgmr.msra.gmra.mrb[18].mxu1 %vm843_vm3, %v2002_v39  ;;  %v4153_v39 = vld [vmem:[%s5308_s5 + $0x68] sm:$0xff]  }
 0xe5e   : > { %v4321_v40 = vpop.eup %4320  ;;  %4010 = vmatprep.mubr.msk.bf16.mxu1 %vm4394_vm1, %v4393_v13  ;;  %4003 = vmatpush3.bf16.msra.mxu1 %v4140_v42  ;;  %v2412_v42 = vrot.slane %v4784_v2, %v1297_v28  ;;  %v2493_v28 = vrot.slane %v4784_v2, %v4735_v46 }
 0xe5f   : > { %v2004_v41 = vmul.f32 %v4321_v40, %v4313_v25  ;;  %4004 = vmatprep.subr.bf16.mxu1 %v4393_v13  ;;  %v4154_v40 = vld [vmem:[%s5308_s5 + $0x70] sm:$0xff]  }
 0xe61   : > { %4000 = vmatmul.mubr.msk.f32.vlgmr.msra.gmra.mrb[30].mxu0 %vm843_vm3, %v2004_v41  ;;  %v4155_v41 = vld [vmem:[%s5308_s5 + $0x78] sm:$0xff]  }
 0xe62   : > { %4022 = vmatprep.mubr.msk.bf16.mxu0 %vm4394_vm1, %v4393_v13  ;;  %4005 = vmatpush3.bf16.msra.mxu1 %v4141_v45 }
 0xe63   : > { %4006 = vmatprep.subr.bf16.mxu1 %v4393_v13  ;;  %4015 = vmatpush3.bf16.msra.mxu0 %v4144_v20  ;;  %v4167_v20 = vld [vmem:[%s5310_s7 + $0x2c] ss:$16 sps:$4 sm:$0xff]  }
 0xe64   : > { %4016 = vmatprep.subr.bf16.mxu0 %v4393_v13 }
 0xe66   : > { %4007 = vmatpush3.bf16.msra.mxu1 %v4142_v47 }
 0xe67   : > { %4008 = vmatprep.subr.bf16.mxu1 %v4393_v13 }
 0xe6a   : > { %4009 = vmatpush3.bf16.msra.mxu1 %v4143_v48 }
 0xe6b   : > { %4026 = vmatprep.subr.bf16.mxu1 %v4393_v13 }
 0xec3   : > { %v2074_v43 = vpop.f32.mrb[16].mxu1 }
 0xec4   : > { %v3986_v44 = vpop.f32.mrb[17].mxu1 }
 0xf2c   : > { %v2147_v49 = vpop.f32.mrb[28].mxu0 }
 0xf2d   : > { %2298 = vrot.lane.b32.xlu1 %v2147_v49, %s5325_s25  ;;  %v3991_v51 = vpop.f32.mrb[29].mxu0  ;;  %s359_s25 = sand.u32 1, %s4382_s14  }
 0xf2e   : > { %s360_s20 = scalar_lea.vmem [#allocation2], %s359_s25  ;;  %s3463_s15 = scalar_lea.sflag [#allocation3], %s359_s25 }
 0xf2f   : > { %s3475_s21 = sshll.u32 %s360_s20, 4  ;;  %s5263_s21 = int_to_ptr.vmem [resolvable:$true] %s3475_s21 }
 0xf30   : > { %v2220_v52 = vpop.f32.mrb[18].mxu1  ;;  %s4328_s22 = scalar_lea.vmem %s5263_s21, 16  ;;  %p4335_p0 = scmp.lt.s32.totalorder %s5263_s21, %s4333_s27 }
 0xf31   : > { %2302 = vrot.lane.b32.xlu0 %v2220_v52, %s5326_s29  ;;  %v3996_v53 = vpop.f32.mrb[19].mxu1  ;;  %p4329_p11 = scmp.ne.s32.totalorder %s5263_s21, %s4328_s22  ;;  %p4336_p1 = scmp.lt.s32.totalorder %s4334_s28, %s4328_s22 }
 0xf33   : > { %p4330_p12 = pnand %p4329_p11, %p4496_p5  ;;  %p4337_p2 = por %p4336_p1, %p4335_p0 }
 0xf34   : > { %v2293_v54 = vpop.f32.mrb[30].mxu0 }
 0xf35   : > { %2306 = vrot.lane.b32.xlu1 %v2293_v54, %s5327_s12  ;;  %v4001_v55 = vpop.f32.mrb[31].mxu0  ;;  %p4331_p13 = pneg %p4330_p12 }
 0xf37   : > { %p4338_p3 = pnand %p4337_p2, %p4331_p13 }
 0xf9f   : > { %v2299_v56 = vpop.permute.xlu1 %2298 }
 0xfa0   : > { %v2309_v58 = vsel %vm532_vm2, %v2074_v43, %v2299_v56 }
 0xfa3   : > { %v2303_v57 = vpop.permute.xlu0 %2302 }
 0xfa4   : > { %v2310_v59 = vsel %vm1193_vm4, %v2309_v58, %v2303_v57 }
 0xfa7   : > { %v2307_v60 = vpop.permute.xlu1 %2306 }
 0xfa8   : > { %v2311_v61 = vsel %vm1195_vm5, %v2310_v59, %v2307_v60 }
 0xfa9   : > { %v2312_v62 = vpack.c.bf16 %v2311_v61, %v2311_v61 }
 0xfab   : > { %4011 = vmatmul.mubr.msk.bf16.vlgmr.msra.gmra.mrb[20].mxu1 %vm468_vm0, %v2312_v62 }
 0xfac   : > { %4042 = vmatprep.mubr.msk.bf16.mxu1 %vm4394_vm1, %v4393_v13  ;;  %4027 = vmatpush3.bf16.msra.mxu1 %v4148_v35  ;;  %v4183_v35 = vld [vmem:[%s5310_s7 + $0x88] ss:$16 sps:$4 sm:$0xff]  }
 0xfad   : > { %4028 = vmatprep.subr.bf16.mxu1 %v4393_v13 }
 0xfb0   : > { %4029 = vmatpush3.bf16.msra.mxu1 %v4149_v36  ;;  %v4188_v36 = vld [vmem:[%s5310_s7 + $0xa4] ss:$16 sps:$4 sm:$0xff]  }
 0xfb1   : > { %4030 = vmatprep.subr.bf16.mxu1 %v4393_v13 }
 0xfb4   : > { %4031 = vmatpush3.bf16.msra.mxu1 %v4150_v37  ;;  %v4191_v37 = vld [vmem:[%s5310_s7 + $0xac] ss:$16 sps:$4 sm:$0xff]  }
 0xfb5   : > { %4032 = vmatprep.subr.bf16.mxu1 %v4393_v13 }
 0xfb8   : > { %4033 = vmatpush3.bf16.msra.mxu1 %v4151_v30  ;;  %v4186_v30 = vld [vmem:[%s5310_s7 + $0xa0] ss:$16 sps:$4 sm:$0xff]  }
 0xfb9   : > { %4034 = vmatprep.subr.bf16.mxu1 %v4393_v13 }
 0xfbc   : > { %4035 = vmatpush3.bf16.msra.mxu1 %v4152_v38  ;;  %v4189_v38 = vld [vmem:[%s5310_s7 + $0xa8] ss:$16 sps:$4 sm:$0xff]  }
 0xfbd   : > { %4036 = vmatprep.subr.bf16.mxu1 %v4393_v13 }
 0xfc0   : > { %4037 = vmatpush3.bf16.msra.mxu1 %v4153_v39  ;;  %v4194_v39 = vld [vmem:[%s5310_s7 + $0xc4] ss:$16 sps:$4 sm:$0xff]  }
 0xfc1   : > { %4038 = vmatprep.subr.bf16.mxu1 %v4393_v13 }
 0xfc4   : > { %4039 = vmatpush3.bf16.msra.mxu1 %v4154_v40  ;;  %v4197_v40 = vld [vmem:[%s5310_s7 + $0xcc] ss:$16 sps:$4 sm:$0xff]  }
 0xfc5   : > { %4040 = vmatprep.subr.bf16.mxu1 %v4393_v13 }
 0xfc8   : > { %4041 = vmatpush3.bf16.msra.mxu1 %v4155_v41  ;;  %v4192_v41 = vld [vmem:[%s5310_s7 + $0xc0] ss:$16 sps:$4 sm:$0xff]  }
0x107e   : > { %v2378_v0 = vpop.f32.mrb[20].mxu1 }
0x107f   : > { %v2379_v9 = vadd.f32 %v2378_v0, %v2316_v63  ;;  %v4012_v1 = vpop.f32.mrb[21].mxu1 }
0x1080   : > { %v2381_v3 = vpop.f32.mrb[22].mxu1 }
0x1081   : > { %v4013_v4 = vpop.f32.mrb[23].mxu1  ;;  %v2384_v5 = vadd.f32 %v2379_v9, %v4774_v22  ;;  %v4145_v22 = vld [vmem:[%s5307_s4 + $0x28] sm:$0xff]  }
0x1082   : > { %4017 = vmatpush3.bf16.msra.mxu0 %v4145_v22  ;;  %v4162_v22 = vld [vmem:[%s5310_s7 + $0x20] ss:$16 sps:$4 sm:$0xff]  }
0x1083   : > { %v2385_v6 = vsel %vm468_vm0, %v2384_v5, 0.0  ;;  %4018 = vmatprep.subr.bf16.mxu0 %v4393_v13 }
0x1084   : > { %2386 = vadd.xlane.f32.xlu0 %v2385_v6 }
0x1086   : > { %4019 = vmatpush3.bf16.msra.mxu0 %v4146_v21  ;;  %v4165_v21 = vld [vmem:[%s5310_s7 + $0x28] ss:$16 sps:$4 sm:$0xff]  }
0x1087   : > { %4020 = vmatprep.subr.bf16.mxu0 %v4393_v13 }
0x108a   : > { %4021 = vmatpush3.bf16.msra.mxu0 %v4147_v23  ;;  %v4170_v23 = vld [vmem:[%s5310_s7 + $0x44] ss:$16 sps:$4 sm:$0xff]  }
0x1111   : > { %v2387_v10 = vpop.xlane.xlu0 %2386 }
0x1112   : > { %v2388_v32 = vmul.f32 0.015625, %v2387_v10  ;;  %v4156_v10 = vld [vmem:[%s5310_s7] ss:$16 sps:$4 sm:$0xff]  }
0x1114   : > { %v2389_v17 = vsub.f32 %v2384_v5, %v2388_v32  ;;  %v4158_v32 = vld [vmem:[%s5310_s7 + $0x4] ss:$16 sps:$4 sm:$0xff]  }
0x1115   : > { %3033 = vmatprep.subr.bf16.mxu0 %v4158_v32 }
0x1116   : > { %v2390_v18 = vmul.f32 %v2389_v17, %v2389_v17 }
0x1118   : > { %v2391_v19 = vsel %vm468_vm0, %v2390_v18, 0.0  ;;  %v4161_v18 = vld [vmem:[%s5310_s7 + $0xc] ss:$16 sps:$4 sm:$0xff]  }
0x1119   : > { %2392 = vadd.xlane.f32.xlu1 %v2391_v19  ;;  %v4164_v19 = vld [vmem:[%s5310_s7 + $0x24] ss:$16 sps:$4 sm:$0xff]   ;;  %3074 = vmatprep.subr.bf16.mxu1 %v4161_v18 }
0x11a6   : > { %v2393_v15 = vpop.xlane.xlu1 %2392 }
0x11a7   : > { %v2394_v24 = vmul.f32 0.015625, %v2393_v15  ;;  %v4173_v15 = vld [vmem:[%s5310_s7 + $0x4c] ss:$16 sps:$4 sm:$0xff]  }
0x11a9   : > { %v2395_v25 = vadd.f32 1e-12, %v2394_v24  ;;  %v4168_v24 = vld [vmem:[%s5310_s7 + $0x40] ss:$16 sps:$4 sm:$0xff]  }
0x11ab   : > { %4322 = vrsqrt.f32 %v2395_v25  ;;  %v4171_v25 = vld [vmem:[%s5310_s7 + $0x48] ss:$16 sps:$4 sm:$0xff]  }
0x11b5   : > { %v4323_v27 = vpop.eup %4322 }
0x11b6   : > { %v2397_v29 = vmul.f32 %v4323_v27, %v2389_v17  ;;  %v4159_v17 = vld [vmem:[%s5310_s7 + $0x8] ss:$16 sps:$4 sm:$0xff]   ;;  %v4179_v27 = vld [vmem:[%s5310_s7 + $0x6c] ss:$16 sps:$4 sm:$0xff]  }
0x11b8   : > { %v2402_v33 = vmul.f32 %v2401_v26, %v2397_v29  ;;  %v4176_v26 = vld [vmem:[%s5310_s7 + $0x64] ss:$16 sps:$4 sm:$0xff]   ;;  %v4174_v29 = vld [vmem:[%s5310_s7 + $0x60] ss:$16 sps:$4 sm:$0xff]  }
0x11ba   : > { %v2407_v14 = vadd.f32 %v2406_v31, %v2402_v33  ;;  %v4177_v31 = vld [vmem:[%s5310_s7 + $0x68] ss:$16 sps:$4 sm:$0xff]   ;;  %v4182_v33 = vld [vmem:[%s5310_s7 + $0x84] ss:$16 sps:$4 sm:$0xff]  }
0x11bc   : > { %v2408_v34 = vpack.c.bf16 %v2407_v14, %v2407_v14 }
0x11be   : > { %4023 = vmatmul.mubr.msk.bf16.vlgmr.msra.gmra.mrb[32].mxu0 %vm468_vm0, %v2408_v34  ;;  %v4180_v34 = vld [vmem:[%s5310_s7 + $0x80] ss:$16 sps:$4 sm:$0xff]  }
0x11bf   : > { %3034 = vmatpush1.bf16.msra.mxu0 %v4156_v10  ;;  %v4237_v10 = vld [vmem:[%s5310_s7 + $0x1a8] ss:$16 sps:$4 sm:$0xff]  }
0x11c0   : > { %3035 = vmatprep.subr.bf16.mxu0 %v4164_v19  ;;  %v4242_v19 = vld [vmem:[%s5310_s7 + $0x1c4] ss:$16 sps:$4 sm:$0xff]  }
0x11c3   : > { %3036 = vmatpush1.bf16.msra.mxu0 %v4162_v22  ;;  %v4240_v22 = vld [vmem:[%s5310_s7 + $0x1c0] ss:$16 sps:$4 sm:$0xff]  }
0x11c4   : > { %3037 = vmatprep.subr.bf16.mxu0 %v4170_v23  ;;  %v2599_v23 = vrot.slane %v4784_v2, %v1484_v11  ;;  %v4246_v11 = vld [vmem:[%s5310_s7 + $0x1e0] ss:$16 sps:$4 sm:$0xff]  }
0x11c7   : > { %3038 = vmatpush1.bf16.msra.mxu0 %v4168_v24 }
0x11c8   : > { %3039 = vmatprep.subr.bf16.mxu0 %v4176_v26  ;;  %v4248_v26 = vld [vmem:[%s5310_s7 + $0x1e4] ss:$16 sps:$4 sm:$0xff]  }
0x11cb   : > { %3040 = vmatpush1.bf16.msra.mxu0 %v4174_v29 }
0x11cc   : > { %3041 = vmatprep.subr.bf16.mxu0 %v4182_v33 }
0x11cf   : > { %3042 = vmatpush1.bf16.msra.mxu0 %v4180_v34 }
0x11d0   : > { %3043 = vmatprep.subr.bf16.mxu0 %v4188_v36 }
0x11d3   : > { %3044 = vmatpush1.bf16.msra.mxu0 %v4186_v30 }
0x11d4   : > { %3045 = vmatprep.subr.bf16.mxu0 %v4194_v39 }
0x11d7   : > { %3046 = vmatpush1.bf16.msra.mxu0 %v4192_v41 }
0x1291   : > { %v2474_v43 = vpop.f32.mrb[32].mxu0 }
0x1292   : > { %v2475_v44 = vadd.f32 %v2474_v43, %v2412_v42  ;;  %v4024_v45 = vpop.f32.mrb[33].mxu0  ;;  %v4195_v42 = vld [vmem:[%s5310_s7 + $0xc8] ss:$16 sps:$4 sm:$0xff]   ;;  %v4200_v43 = vld [vmem:[%s5310_s7 + $0xe4] ss:$16 sps:$4 sm:$0xff]  }
0x1293   : > { %v2477_v47 = vpop.f32.mrb[34].mxu0  ;;  %v4198_v45 = vld [vmem:[%s5310_s7 + $0xe0] ss:$16 sps:$4 sm:$0xff]   ;;  %3047 = vmatprep.subr.bf16.mxu0 %v4200_v43 }
0x1294   : > { %v2480_v48 = vmul.f32 %v2475_v44, %v2475_v44  ;;  %v4025_v49 = vpop.f32.mrb[35].mxu0  ;;  %v4201_v47 = vld [vmem:[%s5310_s7 + $0xe8] ss:$16 sps:$4 sm:$0xff]   ;;  %3048 = vmatpush1.bf16.msra.mxu0 %v4198_v45  ;;  %v4254_v43 = vld [vmem:[%s5311_s8] sm:$0xff]  }
0x1295   : > { %v4209_v49 = vld [vmem:[%s5310_s7 + $0x10c] ss:$16 sps:$4 sm:$0xff]  }
0x1296   : > { %v2481_v51 = vmul.f32 %v2480_v48, %v2475_v44  ;;  %v4206_v48 = vld [vmem:[%s5310_s7 + $0x104] ss:$16 sps:$4 sm:$0xff]   ;;  %v4256_v45 = vld [vmem:[%s5311_s8 + $0x48] sm:$0xff]  }
0x1297   : > { %3049 = vmatprep.subr.bf16.mxu0 %v4206_v48  ;;  %v4258_v48 = vld [vmem:[%s5311_s8 + $0x8] sm:$0xff]  }
0x1298   : > { %v2482_v52 = vmul.f32 0.044715, %v2481_v51  ;;  %v4204_v51 = vld [vmem:[%s5310_s7 + $0x100] ss:$16 sps:$4 sm:$0xff]  }
0x1299   : > { %3050 = vmatpush1.bf16.msra.mxu0 %v4204_v51  ;;  %v4260_v51 = vld [vmem:[%s5311_s8 + $0x50] sm:$0xff]  }
0x129a   : > { %v2483_v53 = vadd.f32 %v2482_v52, %v2475_v44  ;;  %v4207_v52 = vld [vmem:[%s5310_s7 + $0x108] ss:$16 sps:$4 sm:$0xff]  }
0x129c   : > { %v2484_v54 = vmul.f32 0.7978846, %v2483_v53  ;;  %v4212_v53 = vld [vmem:[%s5310_s7 + $0x124] ss:$16 sps:$4 sm:$0xff]  }
0x129d   : > { %3051 = vmatprep.subr.bf16.mxu0 %v4212_v53  ;;  %v4262_v53 = vld [vmem:[%s5311_s8 + $0x10] sm:$0xff]  }
0x129e   : > { %4324 = vtanh.f32 %v2484_v54  ;;  %v4215_v54 = vld [vmem:[%s5310_s7 + $0x12c] ss:$16 sps:$4 sm:$0xff]  }
0x12a8   : > { %v4325_v55 = vpop.eup %4324 }
0x12a9   : > { %v2486_v56 = vadd.f32 1.0, %v4325_v55  ;;  %v4210_v55 = vld [vmem:[%s5310_s7 + $0x120] ss:$16 sps:$4 sm:$0xff]  }
0x12aa   : > { %3052 = vmatpush1.bf16.msra.mxu0 %v4210_v55  ;;  %v4264_v55 = vld [vmem:[%s5311_s8 + $0x58] sm:$0xff]  }
0x12ab   : > { %v2487_v57 = vmul.f32 0.5, %v2486_v56  ;;  %v4213_v56 = vld [vmem:[%s5310_s7 + $0x128] ss:$16 sps:$4 sm:$0xff]  }
0x12ad   : > { %v2488_v13 = vmul.f32 %v2487_v57, %v2475_v44  ;;  %v4203_v44 = vld [vmem:[%s5310_s7 + $0xec] ss:$16 sps:$4 sm:$0xff]   ;;  %v4218_v57 = vld [vmem:[%s5310_s7 + $0x144] ss:$16 sps:$4 sm:$0xff]  }
0x12ae   : > { %3053 = vmatprep.subr.bf16.mxu0 %v4218_v57  ;;  %v4266_v57 = vld [vmem:[%s5311_s8 + $0x18] sm:$0xff]  }
0x12af   : > { %v2489_v58 = vpack.c.bf16 %v2488_v13, %v2488_v13  ;;  %v4221_v13 = vld [vmem:[%s5310_s7 + $0x14c] ss:$16 sps:$4 sm:$0xff]  }
0x12b1   : > { %4043 = vmatmul.mubr.bf16.vlgmr.msra.gmra.mrb[24].mxu1 %v2489_v58  ;;  %v4216_v58 = vld [vmem:[%s5310_s7 + $0x140] ss:$16 sps:$4 sm:$0xff]  }
0x12b2   : > { %3075 = vmatpush1.bf16.msra.mxu1 %v4159_v17  ;;  %3054 = vmatpush1.bf16.msra.mxu0 %v4216_v58  ;;  %v4268_v58 = vld [vmem:[%s5311_s8 + $0x60] sm:$0xff]  }
0x12b3   : > { %3076 = vmatprep.subr.bf16.mxu1 %v4167_v20  ;;  %v4245_v20 = vld [vmem:[%s5310_s7 + $0x1cc] ss:$16 sps:$4 sm:$0xff]  }
0x12b6   : > { %3077 = vmatpush1.bf16.msra.mxu1 %v4165_v21  ;;  %v4243_v21 = vld [vmem:[%s5310_s7 + $0x1c8] ss:$16 sps:$4 sm:$0xff]  }
0x12b7   : > { %3078 = vmatprep.subr.bf16.mxu1 %v4173_v15 }
0x12ba   : > { %3079 = vmatpush1.bf16.msra.mxu1 %v4171_v25  ;;  %v2604_v25 = vrot.slane %v4784_v2, %v1489_v16  ;;  %v4252_v16 = vld [vmem:[%s5311_s8 + $0x40] sm:$0xff]  }
0x12bb   : > { %3080 = vmatprep.subr.bf16.mxu1 %v4179_v27  ;;  %v4251_v27 = vld [vmem:[%s5310_s7 + $0x1ec] ss:$16 sps:$4 sm:$0xff]   ;;  %v4253_v2 = vld [vmem:[%s5311_s8 + $0xc0] sm:$0xff]  }
0x12be   : > { %3081 = vmatpush1.bf16.msra.mxu1 %v4177_v31 }
0x1384   : > { %v2576_v59 = vpop.f32.mrb[24].mxu1 }
0x1385   : > { %v2577_v60 = vadd.f32 %v2576_v59, %v2493_v28  ;;  %v4044_v61 = vpop.f32.mrb[25].mxu1  ;;  %v4219_v28 = vld [vmem:[%s5310_s7 + $0x148] ss:$16 sps:$4 sm:$0xff]   ;;  %v4224_v59 = vld [vmem:[%s5310_s7 + $0x164] ss:$16 sps:$4 sm:$0xff]  }
0x1386   : > { %v2579_v62 = vpop.f32.mrb[26].mxu1  ;;  %v4222_v61 = vld [vmem:[%s5310_s7 + $0x160] ss:$16 sps:$4 sm:$0xff]   ;;  %3055 = vmatprep.subr.bf16.mxu0 %v4224_v59 }
0x1387   : > { %v4045_v63 = vpop.f32.mrb[27].mxu1  ;;  %v2582_v0 = vadd.f32 %v2577_v60, %v2407_v14  ;;  %v4185_v14 = vld [vmem:[%s5310_s7 + $0x8c] ss:$16 sps:$4 sm:$0xff]   ;;  %v4225_v62 = vld [vmem:[%s5310_s7 + $0x168] ss:$16 sps:$4 sm:$0xff]   ;;  %3056 = vmatpush1.bf16.msra.mxu0 %v4222_v61  ;;  %v4270_v59 = vld [vmem:[%s5311_s8 + $0x20] sm:$0xff]  }
0x1388   : > { %3082 = vmatprep.subr.bf16.mxu1 %v4185_v14  ;;  %v4227_v60 = vld [vmem:[%s5310_s7 + $0x16c] ss:$16 sps:$4 sm:$0xff]   ;;  %v4230_v63 = vld [vmem:[%s5310_s7 + $0x184] ss:$16 sps:$4 sm:$0xff]  }
0x1389   : > { %v2583_v9 = vsel %vm468_vm0, %v2582_v0, 0.0  ;;  %3083 = vmatpush1.bf16.msra.mxu1 %v4183_v35  ;;  %3057 = vmatprep.subr.bf16.mxu0 %v4230_v63  ;;  %v4272_v61 = vld [vmem:[%s5311_s8 + $0x68] sm:$0xff]  }
0x138a   : > { %2584 = vadd.xlane.f32.xlu0 %v2583_v9  ;;  %3084 = vmatprep.subr.bf16.mxu1 %v4191_v37  ;;  %v4228_v9 = vld [vmem:[%s5310_s7 + $0x180] ss:$16 sps:$4 sm:$0xff]   ;;  %v4274_v63 = vld [vmem:[%s5311_s8 + $0x28] sm:$0xff]  }
0x138b   : > { %3058 = vmatpush1.bf16.msra.mxu0 %v4228_v9  ;;  %v4276_v9 = vld [vmem:[%s5311_s8 + $0x70] sm:$0xff]  }
0x138d   : > { %3085 = vmatpush1.bf16.msra.mxu1 %v4189_v38 }
0x138e   : > { %3086 = vmatprep.subr.bf16.mxu1 %v4197_v40 }
0x1391   : > { %3087 = vmatpush1.bf16.msra.mxu1 %v4195_v42 }
0x1392   : > { %3088 = vmatprep.subr.bf16.mxu1 %v4203_v44  ;;  %v4255_v44 = vld [vmem:[%s5311_s8 + $0x80] sm:$0xff]  }
0x1395   : > { %3089 = vmatpush1.bf16.msra.mxu1 %v4201_v47  ;;  %v4257_v47 = vld [vmem:[%s5311_s8 + $0xc8] sm:$0xff]  }
0x1396   : > { %3090 = vmatprep.subr.bf16.mxu1 %v4209_v49  ;;  %v4259_v49 = vld [vmem:[%s5311_s8 + $0x88] sm:$0xff]  }
0x1399   : > { %3091 = vmatpush1.bf16.msra.mxu1 %v4207_v52  ;;  %v4261_v52 = vld [vmem:[%s5311_s8 + $0xd0] sm:$0xff]  }
0x139a   : > { %3092 = vmatprep.subr.bf16.mxu1 %v4215_v54  ;;  %v4263_v54 = vld [vmem:[%s5311_s8 + $0x90] sm:$0xff]  }
0x139d   : > { %3093 = vmatpush1.bf16.msra.mxu1 %v4213_v56  ;;  %v4265_v56 = vld [vmem:[%s5311_s8 + $0xd8] sm:$0xff]  }
0x139e   : > { %3094 = vmatprep.subr.bf16.mxu1 %v4221_v13  ;;  %v4267_v13 = vld [vmem:[%s5311_s8 + $0x98] sm:$0xff]  }
0x13a1   : > { %3095 = vmatpush1.bf16.msra.mxu1 %v4219_v28  ;;  %v4269_v28 = vld [vmem:[%s5311_s8 + $0xe0] sm:$0xff]  }
0x13a2   : > { %3096 = vmatprep.subr.bf16.mxu1 %v4227_v60  ;;  %v4271_v60 = vld [vmem:[%s5311_s8 + $0xa0] sm:$0xff]  }
0x13a5   : > { %3097 = vmatpush1.bf16.msra.mxu1 %v4225_v62  ;;  %v4273_v62 = vld [vmem:[%s5311_s8 + $0xe8] sm:$0xff]  }
0x1417   : > { %v2585_v1 = vpop.xlane.xlu0 %2584 }
0x1418   : > { %v2586_v3 = vmul.f32 0.015625, %v2585_v1  ;;  %v4231_v1 = vld [vmem:[%s5310_s7 + $0x188] ss:$16 sps:$4 sm:$0xff]  }
0x141a   : > { %v4943_v4 = vsub.f32 %v2582_v0, %v2586_v3  ;;  %v4233_v0 = vld [vmem:[%s5310_s7 + $0x18c] ss:$16 sps:$4 sm:$0xff]   ;;  %v4236_v3 = vld [vmem:[%s5310_s7 + $0x1a4] ss:$16 sps:$4 sm:$0xff]  }
0x141b   : > { %3098 = vmatprep.subr.bf16.mxu1 %v4233_v0  ;;  %3059 = vmatprep.subr.bf16.mxu0 %v4236_v3  ;;  %v4275_v0 = vld [vmem:[%s5311_s8 + $0xa8] sm:$0xff]   ;;  %v4278_v3 = vld [vmem:[%s5311_s8 + $0x30] sm:$0xff]  }
0x141c   : > { %v2588_v5 = vmul.f32 %v4943_v4, %v4943_v4  ;;  %3099 = vmatpush1.bf16.msra.mxu1 %v4231_v1  ;;  %v4277_v1 = vld [vmem:[%s5311_s8 + $0xf0] sm:$0xff]  }
0x141e   : > { %v2589_v6 = vsel %vm468_vm0, %v2588_v5, 0.0  ;;  %v4239_v5 = vld [vmem:[%s5310_s7 + $0x1ac] ss:$16 sps:$4 sm:$0xff]  }
0x141f   : > { %2590 = vadd.xlane.f32.xlu0 %v2589_v6  ;;  %v4234_v6 = vld [vmem:[%s5310_s7 + $0x1a0] ss:$16 sps:$4 sm:$0xff]   ;;  %3100 = vmatprep.subr.bf16.mxu1 %v4239_v5 }
0x1420   : > { %3060 = vmatpush1.bf16.msra.mxu0 %v4234_v6  ;;  %3101 = vmatpush1.bf16.msra.mxu1 %v4237_v10  ;;  %v4279_v5 = vld [vmem:[%s5311_s8 + $0xb0] sm:$0xff]   ;;  %v4280_v6 = vld [vmem:[%s5311_s8 + $0x78] sm:$0xff]  }
0x1421   : > { %3061 = vmatprep.subr.bf16.mxu0 %v4242_v19  ;;  %3102 = vmatprep.subr.bf16.mxu1 %v4245_v20  ;;  %v4281_v10 = vld [vmem:[%s5311_s8 + $0xf8] sm:$0xff]  }
0x1424   : > { %3062 = vmatpush1.bf16.msra.mxu0 %v4240_v22  ;;  %3103 = vmatpush1.bf16.msra.mxu1 %v4243_v21 }
0x1425   : > { %3063 = vmatprep.subr.bf16.mxu0 %v4248_v26  ;;  %3104 = vmatprep.subr.bf16.mxu1 %v4251_v27 }
0x1428   : > { %3064 = vmatpush1.bf16.msra.mxu0 %v4246_v11 }
0x1429   : > { %3834 = vmatprep.subr.bf16.mxu0 %v4252_v16 }
0x14ac   : > { %v2591_v32 = vpop.xlane.xlu0 %2590 }
0x14ad   : > { %v2592_v17 = vmul.f32 0.015625, %v2591_v32  ;;  %v4282_v32 = vld [vmem:[%s5311_s8 + $0x38] sm:$0xff]  }
0x14af   : > { %v2593_v18 = vadd.f32 1e-12, %v2592_v17  ;;  %v4283_v17 = vld [vmem:[%s5311_s8 + $0xb8] sm:$0xff]  }
0x14b1   : > { %4326 = vrsqrt.f32 %v2593_v18  ;;  %v2685_v18 = vld [vmem:[%s5312_s9] ss:$2 sm:$0xf] }
0x14b2   : > { %v3016_v19 = vrot.slane %v2685_v18, %v4662_v50  ;;  %v3024_v20 = vrot.slane %v2685_v18, %v4685_v7  ;;  %v3020_v22 = vrot.slane %v2685_v18, %v4735_v46  ;;  %v3028_v21 = vrot.slane %v2685_v18, %v4688_v8 }
0x14bb   : > { %v4327_v15 = vpop.eup %4326 }
0x14bc   : > { %v2595_v24 = vmul.f32 %v4327_v15, %v4943_v4  ;;  %v4249_v4 = vld [vmem:[%s5310_s7 + $0x1e8] ss:$16 sps:$4 sm:$0xff]  }
0x14bd   : > { %3105 = vmatpush1.bf16.msra.mxu1 %v4249_v4 }
0x14be   : > { %v2600_v29 = vmul.f32 %v2599_v23, %v2595_v24  ;;  %3856 = vmatprep.subr.bf16.mxu1 %v4253_v2 }
0x14c0   : > { %v2605_v12 = vadd.f32 %v2604_v25, %v2600_v29 }
0x14c2   : > { %v2607_v31 = vrot.slane %v2605_v12, 1  ;;  %v2613_v33 = vrot.slane %v2605_v12, 3  ;;  %v2611_v37 = vrot.slane %v2605_v12, 2 }
0x14c4   : > { %v4095_v14 = vpack.i.bf16 %v2607_v31, %v2613_v33 }
0x14c6   : > { %4096 = vrot.lane.b32.xlu1 %v4095_v14, %s5324_s30 }
0x1538   : > { %v4097_v34 = vpop.permute.xlu1 %4096 }
0x1539   : > { %v4099_v35 = vunpack.i.h.bf16 %v4097_v34  ;;  %v4098_v36 = vunpack.i.l.bf16 %v4097_v34 }
0x153b   : > { %v2617_v30 = vsel %vm468_vm0, %v2605_v12, %v4099_v35  ;;  %v2618_v38 = vsel %vm468_vm0, %v2611_v37, %v4098_v36  ;;  %v3187_v37 = vld [vmem:[%s5312_s9 + $0x1] sm:$0x1] }
0x153c   : > { %v2619_v39 = vpack.c.bf16 %v2617_v30, %v2617_v30  ;;  %v2620_v40 = vpack.c.bf16 %v2618_v38, %v2618_v38 }
0x153e   : > { %v2688_v41 = vrot.slane %v2619_v39, 2  ;;  %v2689_v42 = vrot.slane %v2620_v40, 2 }
0x1540   : > { %3065 = vmatprep.mubr.bf16.mxu0 %v2689_v42  ;;  %3106 = vmatprep.mubr.bf16.mxu1 %v2689_v42 }
0x1541   : > { %3066 = vmatmul.mubr.bf16.vlgmr.msra.gmra.mrb[36].mxu0 %v2688_v41  ;;  %3107 = vmatmul.mubr.bf16.vlgmr.msra.gmra.mrb[28].mxu1 %v2688_v41 }
0x1542   : > { %3835 = vmatpush3.bf16.msra.mxu0 %v4254_v43  ;;  %3857 = vmatpush3.bf16.msra.mxu1 %v4255_v44 }
0x1543   : > { %3836 = vmatprep.subr.bf16.mxu0 %v4256_v45  ;;  %3858 = vmatprep.subr.bf16.mxu1 %v4257_v47 }
0x1546   : > { %3837 = vmatpush3.bf16.msra.mxu0 %v4258_v48  ;;  %3859 = vmatpush3.bf16.msra.mxu1 %v4259_v49 }
0x1547   : > { %3838 = vmatprep.subr.bf16.mxu0 %v4260_v51  ;;  %3860 = vmatprep.subr.bf16.mxu1 %v4261_v52 }
0x154a   : > { %3839 = vmatpush3.bf16.msra.mxu0 %v4262_v53  ;;  %3861 = vmatpush3.bf16.msra.mxu1 %v4263_v54 }
0x154b   : > { %3840 = vmatprep.subr.bf16.mxu0 %v4264_v55  ;;  %3862 = vmatprep.subr.bf16.mxu1 %v4265_v56 }
0x154e   : > { %3841 = vmatpush3.bf16.msra.mxu0 %v4266_v57  ;;  %3863 = vmatpush3.bf16.msra.mxu1 %v4267_v13 }
0x154f   : > { %3842 = vmatprep.subr.bf16.mxu0 %v4268_v58  ;;  %3864 = vmatprep.subr.bf16.mxu1 %v4269_v28 }
0x1552   : > { %3843 = vmatpush3.bf16.msra.mxu0 %v4270_v59  ;;  %3865 = vmatpush3.bf16.msra.mxu1 %v4271_v60 }
0x1553   : > { %3844 = vmatprep.subr.bf16.mxu0 %v4272_v61  ;;  %3866 = vmatprep.subr.bf16.mxu1 %v4273_v62 }
0x1556   : > { %3845 = vmatpush3.bf16.msra.mxu0 %v4274_v63  ;;  %3867 = vmatpush3.bf16.msra.mxu1 %v4275_v0 }
0x1557   : > { %3846 = vmatprep.subr.bf16.mxu0 %v4276_v9  ;;  %3868 = vmatprep.subr.bf16.mxu1 %v4277_v1 }
0x155a   : > { %3847 = vmatpush3.bf16.msra.mxu0 %v4278_v3  ;;  %3869 = vmatpush3.bf16.msra.mxu1 %v4279_v5 }
0x155b   : > { %3848 = vmatprep.subr.bf16.mxu0 %v4280_v6  ;;  %3870 = vmatprep.subr.bf16.mxu1 %v4281_v10 }
0x155e   : > { %3849 = vmatpush3.bf16.msra.mxu0 %v4282_v32  ;;  %3871 = vmatpush3.bf16.msra.mxu1 %v4283_v17 }
0x1614   : > { %v3067_v23 = vpop.f32.mrb[36].mxu0  ;;  %v3108_v15 = vpop.f32.mrb[28].mxu1 }
0x1615   : > { %v3068_v24 = vadd.f32 %v3067_v23, %v3016_v19  ;;  %v3109_v25 = vadd.f32 %v3108_v15, %v3024_v20  ;;  %v3069_v26 = vpop.f32.mrb[37].mxu0  ;;  %v3110_v27 = vpop.f32.mrb[29].mxu1 }
0x1616   : > { %v3070_v11 = vadd.f32 %v3069_v26, %v3020_v22  ;;  %v3111_v4 = vadd.f32 %v3110_v27, %v3028_v21  ;;  %v3071_v29 = vpop.f32.mrb[38].mxu0  ;;  %v3112_v12 = vpop.f32.mrb[30].mxu1 }
0x1617   : > { %v3115_v16 = vmax.f32 %v3068_v24, 0.0  ;;  %v3117_v2 = vmax.f32 %v3109_v25, 0.0  ;;  %v3072_v50 = vpop.f32.mrb[39].mxu0  ;;  %v3113_v31 = vpop.f32.mrb[31].mxu1 }
0x1618   : > { %v3116_v7 = vmax.f32 %v3070_v11, 0.0  ;;  %v3118_v33 = vmax.f32 %v3111_v4, 0.0 }
0x1619   : > { %v3119_v8 = vpack.c.bf16 %v3115_v16, %v3115_v16  ;;  %v3121_v34 = vpack.c.bf16 %v3117_v2, %v3117_v2 }
0x161a   : > { %v3120_v46 = vpack.c.bf16 %v3116_v7, %v3116_v7  ;;  %v3122_v14 = vpack.c.bf16 %v3118_v33, %v3118_v33 }
0x161c   : > { %3412 = vmatprep.mubr.bf16.mxu0 %v3120_v46  ;;  %3452 = vmatprep.mubr.bf16.mxu1 %v3122_v14 }
0x161d   : > { %3413 = vmatmul.mubr.bf16.vlgmr.msra.gmra.mrb[40].mxu0 %v3119_v8  ;;  %3453 = vmatmul.mubr.bf16.vlgmr.msra.gmra.mrb[32].mxu1 %v3121_v34 }
0x16f0   : > { %v3850_v35 = vpop.f32.mrb[40].mxu0  ;;  %v3872_v36 = vpop.f32.mrb[32].mxu1 }
0x16f1   : > { %v3851_v30 = vpop.f32.mrb[41].mxu0  ;;  %v3873_v38 = vpop.f32.mrb[33].mxu1 }
0x16f2   : > { %v3852_v39 = vadd.f32 %v3851_v30, %v3850_v35  ;;  %v3874_v40 = vadd.f32 %v3873_v38, %v3872_v36  ;;  %v3853_v41 = vpop.f32.mrb[42].mxu0  ;;  %v3875_v42 = vpop.f32.mrb[34].mxu1 }
0x16f3   : > { %v3854_v43 = vpop.f32.mrb[43].mxu0  ;;  %v3876_v44 = vpop.f32.mrb[35].mxu1 }
0x16f4   : > { %v3415_v45 = vadd.f32 %v3852_v39, %v3187_v37 }
0x16f6   : > { %v3455_v47 = vadd.f32 %v3874_v40, %v3415_v45 }
0x16f8   : > { %v3460_v48 = vmax.f32 %v3455_v47, 0.0 }
0x16fa   : > { %3461 = vst [vmem:[%s360_s20] sm:$0x1] %v3460_v48 }
0x16fb   : > { %4341 = shalt.err (!%p4338_p3)
}
0x16fc   : > { %s4342_s25 = scalar_lea.hbm %s5261_s18, 16  ;;  %s4346_s11 = scalar_lea.hbm %s5313_s10, 32 }
0x16fd   : > { %p4343_p4 = scmp.ne.s32.totalorder %s5261_s18, %s4342_s25  ;;  %p4347_p9 = scmp.lt.u32.totalorder %s5261_s18, %s5313_s10 }
0x16fe   : > { %p4348_p10 = scmp.lt.u32.totalorder %s4346_s11, %s4342_s25  ;;  %p4350_p12 = scmp.lt.u32.totalorder %s4342_s25, %s5261_s18 }
0x16ff   : > { %p4344_p7 = pnand %p4343_p4, %p4496_p5 }
0x1700   : > { %p4349_p11 = por %p4348_p10, %p4347_p9 }
0x1701   : > { %p4345_p8 = pneg %p4344_p7 }
0x1702   : > { %p4351_p13 = por %p4350_p12, %p4349_p11 }
0x1704   : > { %p4352_p0 = pnand %p4351_p13, %p4345_p8 }
0x1706   : > { %4355 = shalt.err (!%p4352_p0)
}
0x1707   : > { %4046 = dma.vmem_to_hbm [thread:$0]  (%p4496_p5), %s5263_s21, 16, %s5261_s18, %s3463_s15  }
0x1708 PF: > { %p4052_p1 = scmp.ge.s32.totalorder %s4390_s16, 2  ;;  %s3487_s30 = sand.u32 1, %s4378_s13  }
0x1709   : > { %s3488_s22 = scalar_lea.sflag [#allocation3], %s3487_s30 }
0x170a   : > { %p4049_p2 = pnand %p4052_p1, %p4500_p6 }
0x170c   : > { %4373 = dma.done.wait (!%p4049_p2), %s3488_s22, 16  }
0x170d   : > { %4375 = vsyncadd (!%p4049_p2), %s3488_s22, 4294967280  ;;  %s5328_s17 = sld [smem:[#allocation5_spill]]  ;;  %s5329_s15 = sld [smem:[#allocation6_spill]] }
0x170e   : > { %p20_p3 = scmp.ge.s32.totalorder %s4483_s19, 4   ;;  %s5330_s13 = smov %s4382_s14 }
0x170f   : > { %s5332_s16 = smov %s4483_s19 }
0x1710   :  { %22 = sbr.rel (!%p20_p3) target bundleno = 3 (0x3), region = 103 }
0x1713   : > { %s5331_s14 = smov %s5328_s17 }
0x1717   :  { %3492 = vsyncpa [#allocation3], 1 }
0x1718   :  { %3494 = vsyncpa [#allocation3 + $0x1], 1 }

</bundles_post_ra>
